<compile_context>
chip_gen: v7x
topology: tpu7x:2x2x1
jax: 0.10.0
libtpu: 0.0.40
codegen_flags: <defaults>
</compile_context>

<pallas_src>
import jax
import jax.numpy as jnp
from jax import lax
from jax.experimental import pallas as pl
from jax.experimental.pallas import tpu as pltpu

D_MODEL = 32
D_FF = 64
N_HEADS = 4
D_K = 8
D_V = 8
EPS = 1e-5


def _layernorm(x):
    mu = jnp.mean(x, axis=-1, keepdims=True)
    xc = x - mu
    var = jnp.mean(xc * xc, axis=-1, keepdims=True)
    return xc * lax.rsqrt(var + EPS)


def _attention_block(x_q, x_kv, bias, w16, attn_ref, batch, len_q, len_k, self_attn):
    """One multi-head attention block + residual + LayerNorm.

    x_q:      [batch*len_q, D_MODEL] f32   query-side activations (residual input)
    x_kv:     [batch*len_k, D_MODEL] f32   key/value-side activations
    bias:     [(batch*H*len_q), len_k] f32 additive mask bias (-1e9 at masked positions),
                                           rows ordered (b, h, q)
    w16:      [D_MODEL, 4*H*D_K] bf16      packed [Wq/sqrt(dk) | Wk | Wv | Wo]
    attn_ref: [(batch*H*len_q), len_k]     output ref for the attention maps
    Returns LayerNorm(x_q + ctx_slab @ Wo) as [batch*len_q, D_MODEL] f32.
    """
    H, dk, dv = N_HEADS, D_K, D_V
    xq16 = x_q.astype(jnp.bfloat16)

    # --- fused QKV projection (1 wide matmul for self-attn, Q + KV for cross-attn) ---
    if self_attn:
        qkv = jnp.dot(xq16, w16[:, :3 * H * dk], preferred_element_type=jnp.float32)
        q2d = qkv[:, :H * dk]
        k2d = qkv[:, H * dk:2 * H * dk]
        v2d = qkv[:, 2 * H * dk:3 * H * dk]
    else:
        q2d = jnp.dot(xq16, w16[:, :H * dk], preferred_element_type=jnp.float32)
        kv = jnp.dot(x_kv.astype(jnp.bfloat16), w16[:, H * dk:3 * H * dk],
                     preferred_element_type=jnp.float32)
        k2d = kv[:, :H * dk]
        v2d = kv[:, H * dk:2 * H * dk]

    # --- scores for all (batch, head) pairs ---
    # Static sublane/lane slices (offsets are multiples of 8) -> no transposes; a
    # (B,H)-batched dot_general would unroll to the same tiny MXU pushes, so we assemble
    # once so that softmax + the attention-map store are batched over every head.
    blocks = []
    for b in range(batch):
        for h in range(H):
            qb = q2d[b * len_q:(b + 1) * len_q, h * dk:(h + 1) * dk].astype(jnp.bfloat16)
            kb = k2d[b * len_k:(b + 1) * len_k, h * dk:(h + 1) * dk].astype(jnp.bfloat16)
            blocks.append(jnp.einsum('qd,kd->qk', qb, kb,
                                     preferred_element_type=jnp.float32))
    s = jnp.concatenate(blocks, axis=0) + bias        # [(B*H*Lq), Lk]; Wq pre-scaled

    # --- softmax, batched over all heads ---
    # No row-max subtraction (scores O(1); masked -1e9 underflows to 0); EUP approx rcp.
    e = jnp.exp(s)
    attn = e * pl.reciprocal(jnp.sum(e, axis=-1, keepdims=True), approx=True)
    attn_ref[...] = attn                              # single store of all attention maps

    # --- context heads into one slab, single output projection ---
    rows = []
    for b in range(batch):
        per_head = []
        for h in range(H):
            ab = attn[(b * H + h) * len_q:(b * H + h + 1) * len_q, :].astype(jnp.bfloat16)
            vb = v2d[b * len_k:(b + 1) * len_k, h * dv:(h + 1) * dv].astype(jnp.bfloat16)
            per_head.append(jnp.dot(ab, vb, preferred_element_type=jnp.float32))
        rows.append(jnp.concatenate(per_head, axis=1))
    ctx = jnp.concatenate(rows, axis=0)               # [B*Lq, H*D_V]

    proj = jnp.dot(ctx.astype(jnp.bfloat16), w16[:, 3 * H * dk:],
                   preferred_element_type=jnp.float32)
    return _layernorm(x_q + proj)


def decoder_layer_kernel(dec_ref, enc_ref, bias_ref, w_attn_ref, w_ff_ref,
                         out_ref, sattn_ref, eattn_ref):
    B, Ld, D = dec_ref.shape
    Le = enc_ref.shape[1]

    x = dec_ref[...].reshape(B * Ld, D)               # fold batch into MXU rows
    enc = enc_ref[...].reshape(B * Le, D)

    bias = bias_ref[...]                              # [(B*H*Ld), Ld+Le], precomputed
    sbias = bias[:, :Ld]
    ebias = bias[:, Ld:]

    # 1) masked decoder self-attention + residual + LayerNorm
    y1 = _attention_block(x, x, sbias, w_attn_ref[0], sattn_ref, B, Ld, Ld, True)
    # 2) encoder-decoder attention + residual + LayerNorm
    y2 = _attention_block(y1, enc, ebias, w_attn_ref[1], eattn_ref, B, Ld, Le, False)
    # 3) position-wise feed-forward + residual + LayerNorm
    w_ff = w_ff_ref[...]
    hid = jnp.maximum(jnp.dot(y2.astype(jnp.bfloat16), w_ff[:D, :],
                              preferred_element_type=jnp.float32), 0.0)
    ff = jnp.dot(hid.astype(jnp.bfloat16), w_ff[D:, :D],
                 preferred_element_type=jnp.float32)
    out_ref[...] = _layernorm(ff + y2)


@jax.jit
def decoder_layer(dec_inputs, enc_outputs, dec_self_attn_mask, dec_enc_attn_mask, params):
    wq1, wk1, wv1, wo1, wq2, wk2, wv2, wo2, wf1, wf2 = params
    B, Ld, D = dec_inputs.shape
    Le = enc_outputs.shape[1]
    assert D == D_MODEL

    scale = 1.0 / (D_K ** 0.5)

    def pack_attn(wq, wk, wv, wo):
        # [Wq*scale | Wk | Wv | Wo] -> [D_MODEL, 128]: exactly one bf16 lane tile.
        return jnp.concatenate([wq * scale, wk, wv, wo], axis=1).astype(jnp.bfloat16)

    w_attn = jnp.stack([pack_attn(wq1, wk1, wv1, wo1),
                        pack_attn(wq2, wk2, wv2, wo2)])          # [2, 32, 128] bf16

    # FFN weights packed into one buffer: rows 0:32 = W_ff1 [32,64]; rows 32:96 = W_ff2 [64,32].
    w_ff = jnp.zeros((D_MODEL + D_FF, D_FF), jnp.float32)
    w_ff = w_ff.at[:D_MODEL, :].set(wf1)
    w_ff = w_ff.at[D_MODEL:, :D_MODEL].set(wf2)
    w_ff = w_ff.astype(jnp.bfloat16)                             # [96, 64] bf16

    def expand(mask, lk):
        # mask (1.0 == masked) -> additive -1e9 bias, broadcast over heads, rows (b, h, q).
        bias = jnp.where(mask > 0, jnp.float32(-1e9), jnp.float32(0.0))
        return jnp.broadcast_to(bias[:, None], (B, N_HEADS, Ld, lk)) \
                  .reshape(B * N_HEADS * Ld, lk)

    bias = jnp.concatenate([expand(dec_self_attn_mask, Ld),
                            expand(dec_enc_attn_mask, Le)], axis=1)   # [(B*H*Ld), Ld+Le]

    vmem = pl.BlockSpec(memory_space=pltpu.MemorySpace.VMEM)
    out_shape = (
        jax.ShapeDtypeStruct((B * Ld, D), jnp.float32),
        jax.ShapeDtypeStruct((B * N_HEADS * Ld, Ld), jnp.float32),
        jax.ShapeDtypeStruct((B * N_HEADS * Ld, Le), jnp.float32),
    )

    out2d, sattn, eattn = pl.pallas_call(
        decoder_layer_kernel,
        out_shape=out_shape,
        in_specs=[vmem] * 5,
        out_specs=(vmem, vmem, vmem),
    )(dec_inputs, enc_outputs, bias, w_attn, w_ff)

    # Reshapes outside the kernel are free XLA metadata ops.
    return (out2d.reshape(B, Ld, D),
            sattn.reshape(B, N_HEADS, Ld, Ld),
            eattn.reshape(B, N_HEADS, Ld, Le))


def reference(dec_inputs, enc_outputs, smask, emask, params):
    """Independent pure-JAX (f32) reference mirroring the PyTorch module op-for-op."""
    wq1, wk1, wv1, wo1, wq2, wk2, wv2, wo2, wf1, wf2 = params

    def layer_norm(x):
        mu = x.mean(-1, keepdims=True)
        var = ((x - mu) ** 2).mean(-1, keepdims=True)
        return (x - mu) / jnp.sqrt(var + EPS)

    def mha(x_q, x_kv, mask, wq, wk, wv, wo):
        b, lq, _ = x_q.shape
        lk = x_kv.shape[1]
        q = (x_q @ wq).reshape(b, lq, N_HEADS, D_K).transpose(0, 2, 1, 3)
        k = (x_kv @ wk).reshape(b, lk, N_HEADS, D_K).transpose(0, 2, 1, 3)
        v = (x_kv @ wv).reshape(b, lk, N_HEADS, D_V).transpose(0, 2, 1, 3)
        scores = jnp.einsum('bhqd,bhkd->bhqk', q, k) / jnp.sqrt(jnp.float32(D_K))
        scores = jnp.where(mask[:, None, :, :] > 0, jnp.float32(-1e9), scores)
        attn = jax.nn.softmax(scores, axis=-1)
        ctx = jnp.einsum('bhqk,bhkd->bhqd', attn, v)
        ctx = ctx.transpose(0, 2, 1, 3).reshape(b, lq, N_HEADS * D_V)
        return layer_norm(ctx @ wo + x_q), attn

    y1, sa = mha(dec_inputs, dec_inputs, smask, wq1, wk1, wv1, wo1)
    y2, ea = mha(y1, enc_outputs, emask, wq2, wk2, wv2, wo2)
    hid = jnp.maximum(y2 @ wf1, 0.0)
    y3 = layer_norm(hid @ wf2 + y2)
    return y3, sa, ea


if __name__ == "__main__":
    B, LD, LE = 2, 8, 16
    key = jax.random.PRNGKey(0)
    keys = jax.random.split(key, 12)

    def init(k, shape, fan_in):
        return jax.random.normal(k, shape, jnp.float32) / jnp.sqrt(jnp.float32(fan_in))

    # Linear weights stored as [in, out] (equivalent to PyTorch weight.T), bias-free;
    # LayerNorm uses PyTorch defaults (eps=1e-5, gamma=1, beta=0).
    params = (
        init(keys[0], (D_MODEL, N_HEADS * D_K), D_MODEL),         # self-attn W_Q
        init(keys[1], (D_MODEL, N_HEADS * D_K), D_MODEL),         # self-attn W_K
        init(keys[2], (D_MODEL, N_HEADS * D_V), D_MODEL),         # self-attn W_V
        init(keys[3], (N_HEADS * D_V, D_MODEL), N_HEADS * D_V),   # self-attn fc
        init(keys[4], (D_MODEL, N_HEADS * D_K), D_MODEL),         # enc-attn W_Q
        init(keys[5], (D_MODEL, N_HEADS * D_K), D_MODEL),         # enc-attn W_K
        init(keys[6], (D_MODEL, N_HEADS * D_V), D_MODEL),         # enc-attn W_V
        init(keys[7], (N_HEADS * D_V, D_MODEL), N_HEADS * D_V),   # enc-attn fc
        init(keys[8], (D_MODEL, D_FF), D_MODEL),                  # FFN fc1
        init(keys[9], (D_FF, D_MODEL), D_FF),                     # FFN fc2
    )

    dec_inputs = jax.random.normal(keys[10], (B, LD, D_MODEL), jnp.float32)
    enc_outputs = jax.random.normal(keys[11], (B, LE, D_MODEL), jnp.float32)

    # Decoder self-attention mask: causal (subsequent-position) mask, 1.0 = masked.
    causal = jnp.triu(jnp.ones((LD, LD), jnp.float32), k=1)
    dec_self_attn_mask = jnp.broadcast_to(causal, (B, LD, LD))
    # Encoder-decoder attention mask: synthetic padding mask (last 4 encoder positions
    # masked for batch element 1), 1.0 = masked.
    pad = jnp.zeros((B, LD, LE), jnp.float32)
    dec_enc_attn_mask = pad.at[1, :, LE - 4:].set(1.0)

    out = decoder_layer(dec_inputs, enc_outputs, dec_self_attn_mask,
                        dec_enc_attn_mask, params)
    out = jax.block_until_ready(out)

    ref = reference(dec_inputs, enc_outputs, dec_self_attn_mask,
                    dec_enc_attn_mask, params)

    # Tolerance note: per the perf review the kernel feeds bfloat16 operands to every
    # MXU matmul (f32 accumulate), the softmax uses an EUP approximate reciprocal, and
    # the reference is plain f32 XLA, so allow ~3e-2 of numeric drift across the three
    # stacked sub-layers; any real wiring bug (mask, residual, head mapping, weight
    # packing) produces O(0.1)-O(1) errors.
    for got, want in zip(out, ref):
        assert got.shape == want.shape and got.dtype == want.dtype
        assert jnp.allclose(got, want, rtol=3e-2, atol=3e-2), "mismatch vs reference"

    print("KERNEL_OK")
</pallas_src>

<mosaic_0001>
module attributes {stable_mosaic.version = 11 : i64} {
  func.func @decoder_layer_kernel(%arg0: memref<2x8x32xf32, #tpu.memory_space<vmem>>, %arg1: memref<2x16x32xf32, #tpu.memory_space<vmem>>, %arg2: memref<64x24xf32, #tpu.memory_space<vmem>>, %arg3: memref<2x32x128xbf16, #tpu.memory_space<vmem>>, %arg4: memref<96x64xbf16, #tpu.memory_space<vmem>>, %arg5: memref<16x32xf32, #tpu.memory_space<vmem>>, %arg6: memref<64x8xf32, #tpu.memory_space<vmem>>, %arg7: memref<64x16xf32, #tpu.memory_space<vmem>>) attributes {dimension_semantics = [], scalar_prefetch = 0 : i64, scratch_operands = 0 : i64, tpu.core_type = #tpu.core_type<tc>} {
    %c0 = arith.constant 0 : index
    %c0_0 = arith.constant 0 : index
    %c0_1 = arith.constant 0 : index
    %0 = vector.load %arg0[%c0, %c0_0, %c0_1] : memref<2x8x32xf32, #tpu.memory_space<vmem>>, vector<2x8x32xf32>
    %1 = vector.shape_cast %0 : vector<2x8x32xf32> to vector<16x32xf32>
    %c0_2 = arith.constant 0 : index
    %c0_3 = arith.constant 0 : index
    %c0_4 = arith.constant 0 : index
    %2 = vector.load %arg1[%c0_2, %c0_3, %c0_4] : memref<2x16x32xf32, #tpu.memory_space<vmem>>, vector<2x16x32xf32>
    %3 = vector.shape_cast %2 : vector<2x16x32xf32> to vector<32x32xf32>
    %c0_5 = arith.constant 0 : index
    %c0_6 = arith.constant 0 : index
    %4 = vector.load %arg2[%c0_5, %c0_6] : memref<64x24xf32, #tpu.memory_space<vmem>>, vector<64x24xf32>
    %5 = vector.extract_strided_slice %4 {offsets = [0, 0], sizes = [64, 8], strides = [1, 1]} : vector<64x24xf32> to vector<64x8xf32>
    %6 = vector.extract_strided_slice %4 {offsets = [0, 8], sizes = [64, 16], strides = [1, 1]} : vector<64x24xf32> to vector<64x16xf32>
    %c0_7 = arith.constant 0 : index
    %c0_8 = arith.constant 0 : index
    %c0_9 = arith.constant 0 : index
    %7 = vector.load %arg3[%c0_7, %c0_8, %c0_9] : memref<2x32x128xbf16, #tpu.memory_space<vmem>>, vector<1x32x128xbf16>
    %8 = vector.shape_cast %7 : vector<1x32x128xbf16> to vector<32x128xbf16>
    %9 = arith.truncf %1 : vector<16x32xf32> to vector<16x32xbf16>
    %10 = vector.extract_strided_slice %8 {offsets = [0, 0], sizes = [32, 96], strides = [1, 1]} : vector<32x128xbf16> to vector<32x96xbf16>
    %cst = arith.constant dense<0.000000e+00> : vector<16x96xf32>
    %11 = tpu.matmul %9, %10, %cst {dimension_numbers = #tpu.dot_dimension_numbers<[1], [0], [0], [1], [0, 0, 1, 1], [], []>} : vector<16x32xbf16>, vector<32x96xbf16>, vector<16x96xf32> -> vector<16x96xf32>
    %12 = vector.extract_strided_slice %11 {offsets = [0, 0], sizes = [16, 32], strides = [1, 1]} : vector<16x96xf32> to vector<16x32xf32>
    %13 = vector.extract_strided_slice %11 {offsets = [0, 32], sizes = [16, 32], strides = [1, 1]} : vector<16x96xf32> to vector<16x32xf32>
    %14 = vector.extract_strided_slice %11 {offsets = [0, 64], sizes = [16, 32], strides = [1, 1]} : vector<16x96xf32> to vector<16x32xf32>
    %15 = vector.extract_strided_slice %12 {offsets = [0, 0], sizes = [8, 8], strides = [1, 1]} : vector<16x32xf32> to vector<8x8xf32>
    %16 = arith.truncf %15 : vector<8x8xf32> to vector<8x8xbf16>
    %17 = vector.extract_strided_slice %13 {offsets = [0, 0], sizes = [8, 8], strides = [1, 1]} : vector<16x32xf32> to vector<8x8xf32>
    %18 = arith.truncf %17 : vector<8x8xf32> to vector<8x8xbf16>
    "tpu.trace_start"() <{level = 10 : i32, message = "qd,kd->qk"}> : () -> ()
    %cst_10 = arith.constant dense<0.000000e+00> : vector<8x8xf32>
    %19 = tpu.matmul %16, %18, %cst_10 {dimension_numbers = #tpu.dot_dimension_numbers<[1], [1], [0], [0], [0, 0, 1, 0], [], []>} : vector<8x8xbf16>, vector<8x8xbf16>, vector<8x8xf32> -> vector<8x8xf32>
    "tpu.trace_stop"() : () -> ()
    %20 = vector.extract_strided_slice %12 {offsets = [0, 8], sizes = [8, 8], strides = [1, 1]} : vector<16x32xf32> to vector<8x8xf32>
    %21 = arith.truncf %20 : vector<8x8xf32> to vector<8x8xbf16>
    %22 = vector.extract_strided_slice %13 {offsets = [0, 8], sizes = [8, 8], strides = [1, 1]} : vector<16x32xf32> to vector<8x8xf32>
    %23 = arith.truncf %22 : vector<8x8xf32> to vector<8x8xbf16>
    "tpu.trace_start"() <{level = 10 : i32, message = "qd,kd->qk"}> : () -> ()
    %cst_11 = arith.constant dense<0.000000e+00> : vector<8x8xf32>
    %24 = tpu.matmul %21, %23, %cst_11 {dimension_numbers = #tpu.dot_dimension_numbers<[1], [1], [0], [0], [0, 0, 1, 0], [], []>} : vector<8x8xbf16>, vector<8x8xbf16>, vector<8x8xf32> -> vector<8x8xf32>
    "tpu.trace_stop"() : () -> ()
    %25 = vector.extract_strided_slice %12 {offsets = [0, 16], sizes = [8, 8], strides = [1, 1]} : vector<16x32xf32> to vector<8x8xf32>
    %26 = arith.truncf %25 : vector<8x8xf32> to vector<8x8xbf16>
    %27 = vector.extract_strided_slice %13 {offsets = [0, 16], sizes = [8, 8], strides = [1, 1]} : vector<16x32xf32> to vector<8x8xf32>
    %28 = arith.truncf %27 : vector<8x8xf32> to vector<8x8xbf16>
    "tpu.trace_start"() <{level = 10 : i32, message = "qd,kd->qk"}> : () -> ()
    %cst_12 = arith.constant dense<0.000000e+00> : vector<8x8xf32>
    %29 = tpu.matmul %26, %28, %cst_12 {dimension_numbers = #tpu.dot_dimension_numbers<[1], [1], [0], [0], [0, 0, 1, 0], [], []>} : vector<8x8xbf16>, vector<8x8xbf16>, vector<8x8xf32> -> vector<8x8xf32>
    "tpu.trace_stop"() : () -> ()
    %30 = vector.extract_strided_slice %12 {offsets = [0, 24], sizes = [8, 8], strides = [1, 1]} : vector<16x32xf32> to vector<8x8xf32>
    %31 = arith.truncf %30 : vector<8x8xf32> to vector<8x8xbf16>
    %32 = vector.extract_strided_slice %13 {offsets = [0, 24], sizes = [8, 8], strides = [1, 1]} : vector<16x32xf32> to vector<8x8xf32>
    %33 = arith.truncf %32 : vector<8x8xf32> to vector<8x8xbf16>
    "tpu.trace_start"() <{level = 10 : i32, message = "qd,kd->qk"}> : () -> ()
    %cst_13 = arith.constant dense<0.000000e+00> : vector<8x8xf32>
    %34 = tpu.matmul %31, %33, %cst_13 {dimension_numbers = #tpu.dot_dimension_numbers<[1], [1], [0], [0], [0, 0, 1, 0], [], []>} : vector<8x8xbf16>, vector<8x8xbf16>, vector<8x8xf32> -> vector<8x8xf32>
    "tpu.trace_stop"() : () -> ()
    %35 = vector.extract_strided_slice %12 {offsets = [8, 0], sizes = [8, 8], strides = [1, 1]} : vector<16x32xf32> to vector<8x8xf32>
    %36 = arith.truncf %35 : vector<8x8xf32> to vector<8x8xbf16>
    %37 = vector.extract_strided_slice %13 {offsets = [8, 0], sizes = [8, 8], strides = [1, 1]} : vector<16x32xf32> to vector<8x8xf32>
    %38 = arith.truncf %37 : vector<8x8xf32> to vector<8x8xbf16>
    "tpu.trace_start"() <{level = 10 : i32, message = "qd,kd->qk"}> : () -> ()
    %cst_14 = arith.constant dense<0.000000e+00> : vector<8x8xf32>
    %39 = tpu.matmul %36, %38, %cst_14 {dimension_numbers = #tpu.dot_dimension_numbers<[1], [1], [0], [0], [0, 0, 1, 0], [], []>} : vector<8x8xbf16>, vector<8x8xbf16>, vector<8x8xf32> -> vector<8x8xf32>
    "tpu.trace_stop"() : () -> ()
    %40 = vector.extract_strided_slice %12 {offsets = [8, 8], sizes = [8, 8], strides = [1, 1]} : vector<16x32xf32> to vector<8x8xf32>
    %41 = arith.truncf %40 : vector<8x8xf32> to vector<8x8xbf16>
    %42 = vector.extract_strided_slice %13 {offsets = [8, 8], sizes = [8, 8], strides = [1, 1]} : vector<16x32xf32> to vector<8x8xf32>
    %43 = arith.truncf %42 : vector<8x8xf32> to vector<8x8xbf16>
    "tpu.trace_start"() <{level = 10 : i32, message = "qd,kd->qk"}> : () -> ()
    %cst_15 = arith.constant dense<0.000000e+00> : vector<8x8xf32>
    %44 = tpu.matmul %41, %43, %cst_15 {dimension_numbers = #tpu.dot_dimension_numbers<[1], [1], [0], [0], [0, 0, 1, 0], [], []>} : vector<8x8xbf16>, vector<8x8xbf16>, vector<8x8xf32> -> vector<8x8xf32>
    "tpu.trace_stop"() : () -> ()
    %45 = vector.extract_strided_slice %12 {offsets = [8, 16], sizes = [8, 8], strides = [1, 1]} : vector<16x32xf32> to vector<8x8xf32>
    %46 = arith.truncf %45 : vector<8x8xf32> to vector<8x8xbf16>
    %47 = vector.extract_strided_slice %13 {offsets = [8, 16], sizes = [8, 8], strides = [1, 1]} : vector<16x32xf32> to vector<8x8xf32>
    %48 = arith.truncf %47 : vector<8x8xf32> to vector<8x8xbf16>
    "tpu.trace_start"() <{level = 10 : i32, message = "qd,kd->qk"}> : () -> ()
    %cst_16 = arith.constant dense<0.000000e+00> : vector<8x8xf32>
    %49 = tpu.matmul %46, %48, %cst_16 {dimension_numbers = #tpu.dot_dimension_numbers<[1], [1], [0], [0], [0, 0, 1, 0], [], []>} : vector<8x8xbf16>, vector<8x8xbf16>, vector<8x8xf32> -> vector<8x8xf32>
    "tpu.trace_stop"() : () -> ()
    %50 = vector.extract_strided_slice %12 {offsets = [8, 24], sizes = [8, 8], strides = [1, 1]} : vector<16x32xf32> to vector<8x8xf32>
    %51 = arith.truncf %50 : vector<8x8xf32> to vector<8x8xbf16>
    %52 = vector.extract_strided_slice %13 {offsets = [8, 24], sizes = [8, 8], strides = [1, 1]} : vector<16x32xf32> to vector<8x8xf32>
    %53 = arith.truncf %52 : vector<8x8xf32> to vector<8x8xbf16>
    "tpu.trace_start"() <{level = 10 : i32, message = "qd,kd->qk"}> : () -> ()
    %cst_17 = arith.constant dense<0.000000e+00> : vector<8x8xf32>
    %54 = tpu.matmul %51, %53, %cst_17 {dimension_numbers = #tpu.dot_dimension_numbers<[1], [1], [0], [0], [0, 0, 1, 0], [], []>} : vector<8x8xbf16>, vector<8x8xbf16>, vector<8x8xf32> -> vector<8x8xf32>
    "tpu.trace_stop"() : () -> ()
    %55 = tpu.concatenate %19, %24, %29, %34, %39, %44, %49, %54 in 0 : vector<8x8xf32>, vector<8x8xf32>, vector<8x8xf32>, vector<8x8xf32>, vector<8x8xf32>, vector<8x8xf32>, vector<8x8xf32>, vector<8x8xf32> -> vector<64x8xf32>
    %56 = arith.addf %55, %5 : vector<64x8xf32>
    %57 = math.exp %56 : vector<64x8xf32>
    %cst_18 = arith.constant dense<0.000000e+00> : vector<64xf32>
    %58 = vector.multi_reduction <add>, %57, %cst_18 [1] : vector<64x8xf32> to vector<64xf32>
    %59 = vector.shape_cast %58 : vector<64xf32> to vector<64x1xf32>
    %60 = tpu.reciprocal %59 {approx = true} : vector<64x1xf32> -> vector<64x1xf32>
    %61 = vector.broadcast %60 : vector<64x1xf32> to vector<64x8xf32>
    %62 = arith.mulf %57, %61 : vector<64x8xf32>
    %c0_19 = arith.constant 0 : index
    %c0_20 = arith.constant 0 : index
    %63 = vector.load %arg6[%c0_19, %c0_20] : memref<64x8xf32, #tpu.memory_space<vmem>>, vector<64x8xf32>
    tpu.vector_store %arg6[%c0_19, %c0_20], %62 {strides = array<i32>} : memref<64x8xf32, #tpu.memory_space<vmem>>, vector<64x8xf32>,
    %64 = vector.extract_strided_slice %62 {offsets = [0, 0], sizes = [8, 8], strides = [1, 1]} : vector<64x8xf32> to vector<8x8xf32>
    %65 = arith.truncf %64 : vector<8x8xf32> to vector<8x8xbf16>
    %66 = vector.extract_strided_slice %14 {offsets = [0, 0], sizes = [8, 8], strides = [1, 1]} : vector<16x32xf32> to vector<8x8xf32>
    %67 = arith.truncf %66 : vector<8x8xf32> to vector<8x8xbf16>
    %cst_21 = arith.constant dense<0.000000e+00> : vector<8x8xf32>
    %68 = tpu.matmul %65, %67, %cst_21 {dimension_numbers = #tpu.dot_dimension_numbers<[1], [0], [0], [1], [0, 0, 1, 1], [], []>} : vector<8x8xbf16>, vector<8x8xbf16>, vector<8x8xf32> -> vector<8x8xf32>
    %69 = vector.extract_strided_slice %62 {offsets = [8, 0], sizes = [8, 8], strides = [1, 1]} : vector<64x8xf32> to vector<8x8xf32>
    %70 = arith.truncf %69 : vector<8x8xf32> to vector<8x8xbf16>
    %71 = vector.extract_strided_slice %14 {offsets = [0, 8], sizes = [8, 8], strides = [1, 1]} : vector<16x32xf32> to vector<8x8xf32>
    %72 = arith.truncf %71 : vector<8x8xf32> to vector<8x8xbf16>
    %cst_22 = arith.constant dense<0.000000e+00> : vector<8x8xf32>
    %73 = tpu.matmul %70, %72, %cst_22 {dimension_numbers = #tpu.dot_dimension_numbers<[1], [0], [0], [1], [0, 0, 1, 1], [], []>} : vector<8x8xbf16>, vector<8x8xbf16>, vector<8x8xf32> -> vector<8x8xf32>
    %74 = vector.extract_strided_slice %62 {offsets = [16, 0], sizes = [8, 8], strides = [1, 1]} : vector<64x8xf32> to vector<8x8xf32>
    %75 = arith.truncf %74 : vector<8x8xf32> to vector<8x8xbf16>
    %76 = vector.extract_strided_slice %14 {offsets = [0, 16], sizes = [8, 8], strides = [1, 1]} : vector<16x32xf32> to vector<8x8xf32>
    %77 = arith.truncf %76 : vector<8x8xf32> to vector<8x8xbf16>
    %cst_23 = arith.constant dense<0.000000e+00> : vector<8x8xf32>
    %78 = tpu.matmul %75, %77, %cst_23 {dimension_numbers = #tpu.dot_dimension_numbers<[1], [0], [0], [1], [0, 0, 1, 1], [], []>} : vector<8x8xbf16>, vector<8x8xbf16>, vector<8x8xf32> -> vector<8x8xf32>
    %79 = vector.extract_strided_slice %62 {offsets = [24, 0], sizes = [8, 8], strides = [1, 1]} : vector<64x8xf32> to vector<8x8xf32>
    %80 = arith.truncf %79 : vector<8x8xf32> to vector<8x8xbf16>
    %81 = vector.extract_strided_slice %14 {offsets = [0, 24], sizes = [8, 8], strides = [1, 1]} : vector<16x32xf32> to vector<8x8xf32>
    %82 = arith.truncf %81 : vector<8x8xf32> to vector<8x8xbf16>
    %cst_24 = arith.constant dense<0.000000e+00> : vector<8x8xf32>
    %83 = tpu.matmul %80, %82, %cst_24 {dimension_numbers = #tpu.dot_dimension_numbers<[1], [0], [0], [1], [0, 0, 1, 1], [], []>} : vector<8x8xbf16>, vector<8x8xbf16>, vector<8x8xf32> -> vector<8x8xf32>
    %84 = tpu.concatenate %68, %73, %78, %83 in 1 : vector<8x8xf32>, vector<8x8xf32>, vector<8x8xf32>, vector<8x8xf32> -> vector<8x32xf32>
    %85 = vector.extract_strided_slice %62 {offsets = [32, 0], sizes = [8, 8], strides = [1, 1]} : vector<64x8xf32> to vector<8x8xf32>
    %86 = arith.truncf %85 : vector<8x8xf32> to vector<8x8xbf16>
    %87 = vector.extract_strided_slice %14 {offsets = [8, 0], sizes = [8, 8], strides = [1, 1]} : vector<16x32xf32> to vector<8x8xf32>
    %88 = arith.truncf %87 : vector<8x8xf32> to vector<8x8xbf16>
    %cst_25 = arith.constant dense<0.000000e+00> : vector<8x8xf32>
    %89 = tpu.matmul %86, %88, %cst_25 {dimension_numbers = #tpu.dot_dimension_numbers<[1], [0], [0], [1], [0, 0, 1, 1], [], []>} : vector<8x8xbf16>, vector<8x8xbf16>, vector<8x8xf32> -> vector<8x8xf32>
    %90 = vector.extract_strided_slice %62 {offsets = [40, 0], sizes = [8, 8], strides = [1, 1]} : vector<64x8xf32> to vector<8x8xf32>
    %91 = arith.truncf %90 : vector<8x8xf32> to vector<8x8xbf16>
    %92 = vector.extract_strided_slice %14 {offsets = [8, 8], sizes = [8, 8], strides = [1, 1]} : vector<16x32xf32> to vector<8x8xf32>
    %93 = arith.truncf %92 : vector<8x8xf32> to vector<8x8xbf16>
    %cst_26 = arith.constant dense<0.000000e+00> : vector<8x8xf32>
    %94 = tpu.matmul %91, %93, %cst_26 {dimension_numbers = #tpu.dot_dimension_numbers<[1], [0], [0], [1], [0, 0, 1, 1], [], []>} : vector<8x8xbf16>, vector<8x8xbf16>, vector<8x8xf32> -> vector<8x8xf32>
    %95 = vector.extract_strided_slice %62 {offsets = [48, 0], sizes = [8, 8], strides = [1, 1]} : vector<64x8xf32> to vector<8x8xf32>
    %96 = arith.truncf %95 : vector<8x8xf32> to vector<8x8xbf16>
    %97 = vector.extract_strided_slice %14 {offsets = [8, 16], sizes = [8, 8], strides = [1, 1]} : vector<16x32xf32> to vector<8x8xf32>
    %98 = arith.truncf %97 : vector<8x8xf32> to vector<8x8xbf16>
    %cst_27 = arith.constant dense<0.000000e+00> : vector<8x8xf32>
    %99 = tpu.matmul %96, %98, %cst_27 {dimension_numbers = #tpu.dot_dimension_numbers<[1], [0], [0], [1], [0, 0, 1, 1], [], []>} : vector<8x8xbf16>, vector<8x8xbf16>, vector<8x8xf32> -> vector<8x8xf32>
    %100 = vector.extract_strided_slice %62 {offsets = [56, 0], sizes = [8, 8], strides = [1, 1]} : vector<64x8xf32> to vector<8x8xf32>
    %101 = arith.truncf %100 : vector<8x8xf32> to vector<8x8xbf16>
    %102 = vector.extract_strided_slice %14 {offsets = [8, 24], sizes = [8, 8], strides = [1, 1]} : vector<16x32xf32> to vector<8x8xf32>
    %103 = arith.truncf %102 : vector<8x8xf32> to vector<8x8xbf16>
    %cst_28 = arith.constant dense<0.000000e+00> : vector<8x8xf32>
    %104 = tpu.matmul %101, %103, %cst_28 {dimension_numbers = #tpu.dot_dimension_numbers<[1], [0], [0], [1], [0, 0, 1, 1], [], []>} : vector<8x8xbf16>, vector<8x8xbf16>, vector<8x8xf32> -> vector<8x8xf32>
    %105 = tpu.concatenate %89, %94, %99, %104 in 1 : vector<8x8xf32>, vector<8x8xf32>, vector<8x8xf32>, vector<8x8xf32> -> vector<8x32xf32>
    %106 = tpu.concatenate %84, %105 in 0 : vector<8x32xf32>, vector<8x32xf32> -> vector<16x32xf32>
    %107 = arith.truncf %106 : vector<16x32xf32> to vector<16x32xbf16>
    %108 = vector.extract_strided_slice %8 {offsets = [0, 96], sizes = [32, 32], strides = [1, 1]} : vector<32x128xbf16> to vector<32x32xbf16>
    %cst_29 = arith.constant dense<0.000000e+00> : vector<16x32xf32>
    %109 = tpu.matmul %107, %108, %cst_29 {dimension_numbers = #tpu.dot_dimension_numbers<[1], [0], [0], [1], [0, 0, 1, 1], [], []>} : vector<16x32xbf16>, vector<32x32xbf16>, vector<16x32xf32> -> vector<16x32xf32>
    %110 = arith.addf %1, %109 : vector<16x32xf32>
    %cst_30 = arith.constant dense<0.000000e+00> : vector<16xf32>
    %111 = vector.multi_reduction <add>, %110, %cst_30 [1] : vector<16x32xf32> to vector<16xf32>
    %112 = vector.shape_cast %111 : vector<16xf32> to vector<16x1xf32>
    %cst_31 = arith.constant 3.200000e+01 : f32
    %113 = vector.broadcast %cst_31 : f32 to vector<16x1xf32>
    %114 = arith.divf %112, %113 : vector<16x1xf32>
    %115 = vector.broadcast %114 : vector<16x1xf32> to vector<16x32xf32>
    %116 = arith.subf %110, %115 : vector<16x32xf32>
    %117 = arith.mulf %116, %116 : vector<16x32xf32>
    %cst_32 = arith.constant dense<0.000000e+00> : vector<16xf32>
    %118 = vector.multi_reduction <add>, %117, %cst_32 [1] : vector<16x32xf32> to vector<16xf32>
    %119 = vector.shape_cast %118 : vector<16xf32> to vector<16x1xf32>
    %cst_33 = arith.constant 3.200000e+01 : f32
    %120 = vector.broadcast %cst_33 : f32 to vector<16x1xf32>
    %121 = arith.divf %119, %120 : vector<16x1xf32>
    %cst_34 = arith.constant 9.99999974E-6 : f32
    %122 = vector.broadcast %cst_34 : f32 to vector<16x1xf32>
    %123 = arith.addf %121, %122 : vector<16x1xf32>
    %124 = math.rsqrt %123 : vector<16x1xf32>
    %125 = vector.broadcast %124 : vector<16x1xf32> to vector<16x32xf32>
    %126 = arith.mulf %116, %125 : vector<16x32xf32>
    %c1 = arith.constant 1 : index
    %c0_35 = arith.constant 0 : index
    %c0_36 = arith.constant 0 : index
    %127 = vector.load %arg3[%c1, %c0_35, %c0_36] : memref<2x32x128xbf16, #tpu.memory_space<vmem>>, vector<1x32x128xbf16>
    %128 = vector.shape_cast %127 : vector<1x32x128xbf16> to vector<32x128xbf16>
    %129 = arith.truncf %126 : vector<16x32xf32> to vector<16x32xbf16>
    %130 = vector.extract_strided_slice %128 {offsets = [0, 0], sizes = [32, 32], strides = [1, 1]} : vector<32x128xbf16> to vector<32x32xbf16>
    %cst_37 = arith.constant dense<0.000000e+00> : vector<16x32xf32>
    %131 = tpu.matmul %129, %130, %cst_37 {dimension_numbers = #tpu.dot_dimension_numbers<[1], [0], [0], [1], [0, 0, 1, 1], [], []>} : vector<16x32xbf16>, vector<32x32xbf16>, vector<16x32xf32> -> vector<16x32xf32>
    %132 = arith.truncf %3 : vector<32x32xf32> to vector<32x32xbf16>
    %133 = vector.extract_strided_slice %128 {offsets = [0, 32], sizes = [32, 64], strides = [1, 1]} : vector<32x128xbf16> to vector<32x64xbf16>
    %cst_38 = arith.constant dense<0.000000e+00> : vector<32x64xf32>
    %134 = tpu.matmul %132, %133, %cst_38 {dimension_numbers = #tpu.dot_dimension_numbers<[1], [0], [0], [1], [0, 0, 1, 1], [], []>} : vector<32x32xbf16>, vector<32x64xbf16>, vector<32x64xf32> -> vector<32x64xf32>
    %135 = vector.extract_strided_slice %134 {offsets = [0, 0], sizes = [32, 32], strides = [1, 1]} : vector<32x64xf32> to vector<32x32xf32>
    %136 = vector.extract_strided_slice %134 {offsets = [0, 32], sizes = [32, 32], strides = [1, 1]} : vector<32x64xf32> to vector<32x32xf32>
    %137 = vector.extract_strided_slice %131 {offsets = [0, 0], sizes = [8, 8], strides = [1, 1]} : vector<16x32xf32> to vector<8x8xf32>
    %138 = arith.truncf %137 : vector<8x8xf32> to vector<8x8xbf16>
    %139 = vector.extract_strided_slice %135 {offsets = [0, 0], sizes = [16, 8], strides = [1, 1]} : vector<32x32xf32> to vector<16x8xf32>
    %140 = arith.truncf %139 : vector<16x8xf32> to vector<16x8xbf16>
    "tpu.trace_start"() <{level = 10 : i32, message = "qd,kd->qk"}> : () -> ()
    %cst_39 = arith.constant dense<0.000000e+00> : vector<8x16xf32>
    %141 = tpu.matmul %138, %140, %cst_39 {dimension_numbers = #tpu.dot_dimension_numbers<[1], [1], [0], [0], [0, 0, 1, 0], [], []>} : vector<8x8xbf16>, vector<16x8xbf16>, vector<8x16xf32> -> vector<8x16xf32>
    "tpu.trace_stop"() : () -> ()
    %142 = vector.extract_strided_slice %131 {offsets = [0, 8], sizes = [8, 8], strides = [1, 1]} : vector<16x32xf32> to vector<8x8xf32>
    %143 = arith.truncf %142 : vector<8x8xf32> to vector<8x8xbf16>
    %144 = vector.extract_strided_slice %135 {offsets = [0, 8], sizes = [16, 8], strides = [1, 1]} : vector<32x32xf32> to vector<16x8xf32>
    %145 = arith.truncf %144 : vector<16x8xf32> to vector<16x8xbf16>
    "tpu.trace_start"() <{level = 10 : i32, message = "qd,kd->qk"}> : () -> ()
    %cst_40 = arith.constant dense<0.000000e+00> : vector<8x16xf32>
    %146 = tpu.matmul %143, %145, %cst_40 {dimension_numbers = #tpu.dot_dimension_numbers<[1], [1], [0], [0], [0, 0, 1, 0], [], []>} : vector<8x8xbf16>, vector<16x8xbf16>, vector<8x16xf32> -> vector<8x16xf32>
    "tpu.trace_stop"() : () -> ()
    %147 = vector.extract_strided_slice %131 {offsets = [0, 16], sizes = [8, 8], strides = [1, 1]} : vector<16x32xf32> to vector<8x8xf32>
    %148 = arith.truncf %147 : vector<8x8xf32> to vector<8x8xbf16>
    %149 = vector.extract_strided_slice %135 {offsets = [0, 16], sizes = [16, 8], strides = [1, 1]} : vector<32x32xf32> to vector<16x8xf32>
    %150 = arith.truncf %149 : vector<16x8xf32> to vector<16x8xbf16>
    "tpu.trace_start"() <{level = 10 : i32, message = "qd,kd->qk"}> : () -> ()
    %cst_41 = arith.constant dense<0.000000e+00> : vector<8x16xf32>
    %151 = tpu.matmul %148, %150, %cst_41 {dimension_numbers = #tpu.dot_dimension_numbers<[1], [1], [0], [0], [0, 0, 1, 0], [], []>} : vector<8x8xbf16>, vector<16x8xbf16>, vector<8x16xf32> -> vector<8x16xf32>
    "tpu.trace_stop"() : () -> ()
    %152 = vector.extract_strided_slice %131 {offsets = [0, 24], sizes = [8, 8], strides = [1, 1]} : vector<16x32xf32> to vector<8x8xf32>
    %153 = arith.truncf %152 : vector<8x8xf32> to vector<8x8xbf16>
    %154 = vector.extract_strided_slice %135 {offsets = [0, 24], sizes = [16, 8], strides = [1, 1]} : vector<32x32xf32> to vector<16x8xf32>
    %155 = arith.truncf %154 : vector<16x8xf32> to vector<16x8xbf16>
    "tpu.trace_start"() <{level = 10 : i32, message = "qd,kd->qk"}> : () -> ()
    %cst_42 = arith.constant dense<0.000000e+00> : vector<8x16xf32>
    %156 = tpu.matmul %153, %155, %cst_42 {dimension_numbers = #tpu.dot_dimension_numbers<[1], [1], [0], [0], [0, 0, 1, 0], [], []>} : vector<8x8xbf16>, vector<16x8xbf16>, vector<8x16xf32> -> vector<8x16xf32>
    "tpu.trace_stop"() : () -> ()
    %157 = vector.extract_strided_slice %131 {offsets = [8, 0], sizes = [8, 8], strides = [1, 1]} : vector<16x32xf32> to vector<8x8xf32>
    %158 = arith.truncf %157 : vector<8x8xf32> to vector<8x8xbf16>
    %159 = vector.extract_strided_slice %135 {offsets = [16, 0], sizes = [16, 8], strides = [1, 1]} : vector<32x32xf32> to vector<16x8xf32>
    %160 = arith.truncf %159 : vector<16x8xf32> to vector<16x8xbf16>
    "tpu.trace_start"() <{level = 10 : i32, message = "qd,kd->qk"}> : () -> ()
    %cst_43 = arith.constant dense<0.000000e+00> : vector<8x16xf32>
    %161 = tpu.matmul %158, %160, %cst_43 {dimension_numbers = #tpu.dot_dimension_numbers<[1], [1], [0], [0], [0, 0, 1, 0], [], []>} : vector<8x8xbf16>, vector<16x8xbf16>, vector<8x16xf32> -> vector<8x16xf32>
    "tpu.trace_stop"() : () -> ()
    %162 = vector.extract_strided_slice %131 {offsets = [8, 8], sizes = [8, 8], strides = [1, 1]} : vector<16x32xf32> to vector<8x8xf32>
    %163 = arith.truncf %162 : vector<8x8xf32> to vector<8x8xbf16>
    %164 = vector.extract_strided_slice %135 {offsets = [16, 8], sizes = [16, 8], strides = [1, 1]} : vector<32x32xf32> to vector<16x8xf32>
    %165 = arith.truncf %164 : vector<16x8xf32> to vector<16x8xbf16>
    "tpu.trace_start"() <{level = 10 : i32, message = "qd,kd->qk"}> : () -> ()
    %cst_44 = arith.constant dense<0.000000e+00> : vector<8x16xf32>
    %166 = tpu.matmul %163, %165, %cst_44 {dimension_numbers = #tpu.dot_dimension_numbers<[1], [1], [0], [0], [0, 0, 1, 0], [], []>} : vector<8x8xbf16>, vector<16x8xbf16>, vector<8x16xf32> -> vector<8x16xf32>
    "tpu.trace_stop"() : () -> ()
    %167 = vector.extract_strided_slice %131 {offsets = [8, 16], sizes = [8, 8], strides = [1, 1]} : vector<16x32xf32> to vector<8x8xf32>
    %168 = arith.truncf %167 : vector<8x8xf32> to vector<8x8xbf16>
    %169 = vector.extract_strided_slice %135 {offsets = [16, 16], sizes = [16, 8], strides = [1, 1]} : vector<32x32xf32> to vector<16x8xf32>
    %170 = arith.truncf %169 : vector<16x8xf32> to vector<16x8xbf16>
    "tpu.trace_start"() <{level = 10 : i32, message = "qd,kd->qk"}> : () -> ()
    %cst_45 = arith.constant dense<0.000000e+00> : vector<8x16xf32>
    %171 = tpu.matmul %168, %170, %cst_45 {dimension_numbers = #tpu.dot_dimension_numbers<[1], [1], [0], [0], [0, 0, 1, 0], [], []>} : vector<8x8xbf16>, vector<16x8xbf16>, vector<8x16xf32> -> vector<8x16xf32>
    "tpu.trace_stop"() : () -> ()
    %172 = vector.extract_strided_slice %131 {offsets = [8, 24], sizes = [8, 8], strides = [1, 1]} : vector<16x32xf32> to vector<8x8xf32>
    %173 = arith.truncf %172 : vector<8x8xf32> to vector<8x8xbf16>
    %174 = vector.extract_strided_slice %135 {offsets = [16, 24], sizes = [16, 8], strides = [1, 1]} : vector<32x32xf32> to vector<16x8xf32>
    %175 = arith.truncf %174 : vector<16x8xf32> to vector<16x8xbf16>
    "tpu.trace_start"() <{level = 10 : i32, message = "qd,kd->qk"}> : () -> ()
    %cst_46 = arith.constant dense<0.000000e+00> : vector<8x16xf32>
    %176 = tpu.matmul %173, %175, %cst_46 {dimension_numbers = #tpu.dot_dimension_numbers<[1], [1], [0], [0], [0, 0, 1, 0], [], []>} : vector<8x8xbf16>, vector<16x8xbf16>, vector<8x16xf32> -> vector<8x16xf32>
    "tpu.trace_stop"() : () -> ()
    %177 = tpu.concatenate %141, %146, %151, %156, %161, %166, %171, %176 in 0 : vector<8x16xf32>, vector<8x16xf32>, vector<8x16xf32>, vector<8x16xf32>, vector<8x16xf32>, vector<8x16xf32>, vector<8x16xf32>, vector<8x16xf32> -> vector<64x16xf32>
    %178 = arith.addf %177, %6 : vector<64x16xf32>
    %179 = math.exp %178 : vector<64x16xf32>
    %cst_47 = arith.constant dense<0.000000e+00> : vector<64xf32>
    %180 = vector.multi_reduction <add>, %179, %cst_47 [1] : vector<64x16xf32> to vector<64xf32>
    %181 = vector.shape_cast %180 : vector<64xf32> to vector<64x1xf32>
    %182 = tpu.reciprocal %181 {approx = true} : vector<64x1xf32> -> vector<64x1xf32>
    %183 = vector.broadcast %182 : vector<64x1xf32> to vector<64x16xf32>
    %184 = arith.mulf %179, %183 : vector<64x16xf32>
    %c0_48 = arith.constant 0 : index
    %c0_49 = arith.constant 0 : index
    %185 = vector.load %arg7[%c0_48, %c0_49] : memref<64x16xf32, #tpu.memory_space<vmem>>, vector<64x16xf32>
    tpu.vector_store %arg7[%c0_48, %c0_49], %184 {strides = array<i32>} : memref<64x16xf32, #tpu.memory_space<vmem>>, vector<64x16xf32>,
    %186 = vector.extract_strided_slice %184 {offsets = [0, 0], sizes = [8, 16], strides = [1, 1]} : vector<64x16xf32> to vector<8x16xf32>
    %187 = arith.truncf %186 : vector<8x16xf32> to vector<8x16xbf16>
    %188 = vector.extract_strided_slice %136 {offsets = [0, 0], sizes = [16, 8], strides = [1, 1]} : vector<32x32xf32> to vector<16x8xf32>
    %189 = arith.truncf %188 : vector<16x8xf32> to vector<16x8xbf16>
    %cst_50 = arith.constant dense<0.000000e+00> : vector<8x8xf32>
    %190 = tpu.matmul %187, %189, %cst_50 {dimension_numbers = #tpu.dot_dimension_numbers<[1], [0], [0], [1], [0, 0, 1, 1], [], []>} : vector<8x16xbf16>, vector<16x8xbf16>, vector<8x8xf32> -> vector<8x8xf32>
    %191 = vector.extract_strided_slice %184 {offsets = [8, 0], sizes = [8, 16], strides = [1, 1]} : vector<64x16xf32> to vector<8x16xf32>
    %192 = arith.truncf %191 : vector<8x16xf32> to vector<8x16xbf16>
    %193 = vector.extract_strided_slice %136 {offsets = [0, 8], sizes = [16, 8], strides = [1, 1]} : vector<32x32xf32> to vector<16x8xf32>
    %194 = arith.truncf %193 : vector<16x8xf32> to vector<16x8xbf16>
    %cst_51 = arith.constant dense<0.000000e+00> : vector<8x8xf32>
    %195 = tpu.matmul %192, %194, %cst_51 {dimension_numbers = #tpu.dot_dimension_numbers<[1], [0], [0], [1], [0, 0, 1, 1], [], []>} : vector<8x16xbf16>, vector<16x8xbf16>, vector<8x8xf32> -> vector<8x8xf32>
    %196 = vector.extract_strided_slice %184 {offsets = [16, 0], sizes = [8, 16], strides = [1, 1]} : vector<64x16xf32> to vector<8x16xf32>
    %197 = arith.truncf %196 : vector<8x16xf32> to vector<8x16xbf16>
    %198 = vector.extract_strided_slice %136 {offsets = [0, 16], sizes = [16, 8], strides = [1, 1]} : vector<32x32xf32> to vector<16x8xf32>
    %199 = arith.truncf %198 : vector<16x8xf32> to vector<16x8xbf16>
    %cst_52 = arith.constant dense<0.000000e+00> : vector<8x8xf32>
    %200 = tpu.matmul %197, %199, %cst_52 {dimension_numbers = #tpu.dot_dimension_numbers<[1], [0], [0], [1], [0, 0, 1, 1], [], []>} : vector<8x16xbf16>, vector<16x8xbf16>, vector<8x8xf32> -> vector<8x8xf32>
    %201 = vector.extract_strided_slice %184 {offsets = [24, 0], sizes = [8, 16], strides = [1, 1]} : vector<64x16xf32> to vector<8x16xf32>
    %202 = arith.truncf %201 : vector<8x16xf32> to vector<8x16xbf16>
    %203 = vector.extract_strided_slice %136 {offsets = [0, 24], sizes = [16, 8], strides = [1, 1]} : vector<32x32xf32> to vector<16x8xf32>
    %204 = arith.truncf %203 : vector<16x8xf32> to vector<16x8xbf16>
    %cst_53 = arith.constant dense<0.000000e+00> : vector<8x8xf32>
    %205 = tpu.matmul %202, %204, %cst_53 {dimension_numbers = #tpu.dot_dimension_numbers<[1], [0], [0], [1], [0, 0, 1, 1], [], []>} : vector<8x16xbf16>, vector<16x8xbf16>, vector<8x8xf32> -> vector<8x8xf32>
    %206 = tpu.concatenate %190, %195, %200, %205 in 1 : vector<8x8xf32>, vector<8x8xf32>, vector<8x8xf32>, vector<8x8xf32> -> vector<8x32xf32>
    %207 = vector.extract_strided_slice %184 {offsets = [32, 0], sizes = [8, 16], strides = [1, 1]} : vector<64x16xf32> to vector<8x16xf32>
    %208 = arith.truncf %207 : vector<8x16xf32> to vector<8x16xbf16>
    %209 = vector.extract_strided_slice %136 {offsets = [16, 0], sizes = [16, 8], strides = [1, 1]} : vector<32x32xf32> to vector<16x8xf32>
    %210 = arith.truncf %209 : vector<16x8xf32> to vector<16x8xbf16>
    %cst_54 = arith.constant dense<0.000000e+00> : vector<8x8xf32>
    %211 = tpu.matmul %208, %210, %cst_54 {dimension_numbers = #tpu.dot_dimension_numbers<[1], [0], [0], [1], [0, 0, 1, 1], [], []>} : vector<8x16xbf16>, vector<16x8xbf16>, vector<8x8xf32> -> vector<8x8xf32>
    %212 = vector.extract_strided_slice %184 {offsets = [40, 0], sizes = [8, 16], strides = [1, 1]} : vector<64x16xf32> to vector<8x16xf32>
    %213 = arith.truncf %212 : vector<8x16xf32> to vector<8x16xbf16>
    %214 = vector.extract_strided_slice %136 {offsets = [16, 8], sizes = [16, 8], strides = [1, 1]} : vector<32x32xf32> to vector<16x8xf32>
    %215 = arith.truncf %214 : vector<16x8xf32> to vector<16x8xbf16>
    %cst_55 = arith.constant dense<0.000000e+00> : vector<8x8xf32>
    %216 = tpu.matmul %213, %215, %cst_55 {dimension_numbers = #tpu.dot_dimension_numbers<[1], [0], [0], [1], [0, 0, 1, 1], [], []>} : vector<8x16xbf16>, vector<16x8xbf16>, vector<8x8xf32> -> vector<8x8xf32>
    %217 = vector.extract_strided_slice %184 {offsets = [48, 0], sizes = [8, 16], strides = [1, 1]} : vector<64x16xf32> to vector<8x16xf32>
    %218 = arith.truncf %217 : vector<8x16xf32> to vector<8x16xbf16>
    %219 = vector.extract_strided_slice %136 {offsets = [16, 16], sizes = [16, 8], strides = [1, 1]} : vector<32x32xf32> to vector<16x8xf32>
    %220 = arith.truncf %219 : vector<16x8xf32> to vector<16x8xbf16>
    %cst_56 = arith.constant dense<0.000000e+00> : vector<8x8xf32>
    %221 = tpu.matmul %218, %220, %cst_56 {dimension_numbers = #tpu.dot_dimension_numbers<[1], [0], [0], [1], [0, 0, 1, 1], [], []>} : vector<8x16xbf16>, vector<16x8xbf16>, vector<8x8xf32> -> vector<8x8xf32>
    %222 = vector.extract_strided_slice %184 {offsets = [56, 0], sizes = [8, 16], strides = [1, 1]} : vector<64x16xf32> to vector<8x16xf32>
    %223 = arith.truncf %222 : vector<8x16xf32> to vector<8x16xbf16>
    %224 = vector.extract_strided_slice %136 {offsets = [16, 24], sizes = [16, 8], strides = [1, 1]} : vector<32x32xf32> to vector<16x8xf32>
    %225 = arith.truncf %224 : vector<16x8xf32> to vector<16x8xbf16>
    %cst_57 = arith.constant dense<0.000000e+00> : vector<8x8xf32>
    %226 = tpu.matmul %223, %225, %cst_57 {dimension_numbers = #tpu.dot_dimension_numbers<[1], [0], [0], [1], [0, 0, 1, 1], [], []>} : vector<8x16xbf16>, vector<16x8xbf16>, vector<8x8xf32> -> vector<8x8xf32>
    %227 = tpu.concatenate %211, %216, %221, %226 in 1 : vector<8x8xf32>, vector<8x8xf32>, vector<8x8xf32>, vector<8x8xf32> -> vector<8x32xf32>
    %228 = tpu.concatenate %206, %227 in 0 : vector<8x32xf32>, vector<8x32xf32> -> vector<16x32xf32>
    %229 = arith.truncf %228 : vector<16x32xf32> to vector<16x32xbf16>
    %230 = vector.extract_strided_slice %128 {offsets = [0, 96], sizes = [32, 32], strides = [1, 1]} : vector<32x128xbf16> to vector<32x32xbf16>
    %cst_58 = arith.constant dense<0.000000e+00> : vector<16x32xf32>
    %231 = tpu.matmul %229, %230, %cst_58 {dimension_numbers = #tpu.dot_dimension_numbers<[1], [0], [0], [1], [0, 0, 1, 1], [], []>} : vector<16x32xbf16>, vector<32x32xbf16>, vector<16x32xf32> -> vector<16x32xf32>
    %232 = arith.addf %126, %231 : vector<16x32xf32>
    %cst_59 = arith.constant dense<0.000000e+00> : vector<16xf32>
    %233 = vector.multi_reduction <add>, %232, %cst_59 [1] : vector<16x32xf32> to vector<16xf32>
    %234 = vector.shape_cast %233 : vector<16xf32> to vector<16x1xf32>
    %cst_60 = arith.constant 3.200000e+01 : f32
    %235 = vector.broadcast %cst_60 : f32 to vector<16x1xf32>
    %236 = arith.divf %234, %235 : vector<16x1xf32>
    %237 = vector.broadcast %236 : vector<16x1xf32> to vector<16x32xf32>
    %238 = arith.subf %232, %237 : vector<16x32xf32>
    %239 = arith.mulf %238, %238 : vector<16x32xf32>
    %cst_61 = arith.constant dense<0.000000e+00> : vector<16xf32>
    %240 = vector.multi_reduction <add>, %239, %cst_61 [1] : vector<16x32xf32> to vector<16xf32>
    %241 = vector.shape_cast %240 : vector<16xf32> to vector<16x1xf32>
    %cst_62 = arith.constant 3.200000e+01 : f32
    %242 = vector.broadcast %cst_62 : f32 to vector<16x1xf32>
    %243 = arith.divf %241, %242 : vector<16x1xf32>
    %cst_63 = arith.constant 9.99999974E-6 : f32
    %244 = vector.broadcast %cst_63 : f32 to vector<16x1xf32>
    %245 = arith.addf %243, %244 : vector<16x1xf32>
    %246 = math.rsqrt %245 : vector<16x1xf32>
    %247 = vector.broadcast %246 : vector<16x1xf32> to vector<16x32xf32>
    %248 = arith.mulf %238, %247 : vector<16x32xf32>
    %c0_64 = arith.constant 0 : index
    %c0_65 = arith.constant 0 : index
    %249 = vector.load %arg4[%c0_64, %c0_65] : memref<96x64xbf16, #tpu.memory_space<vmem>>, vector<96x64xbf16>
    %250 = arith.truncf %248 : vector<16x32xf32> to vector<16x32xbf16>
    %251 = vector.extract_strided_slice %249 {offsets = [0, 0], sizes = [32, 64], strides = [1, 1]} : vector<96x64xbf16> to vector<32x64xbf16>
    %cst_66 = arith.constant dense<0.000000e+00> : vector<16x64xf32>
    %252 = tpu.matmul %250, %251, %cst_66 {dimension_numbers = #tpu.dot_dimension_numbers<[1], [0], [0], [1], [0, 0, 1, 1], [], []>} : vector<16x32xbf16>, vector<32x64xbf16>, vector<16x64xf32> -> vector<16x64xf32>
    %cst_67 = arith.constant 0.000000e+00 : f32
    %253 = vector.broadcast %cst_67 : f32 to vector<16x64xf32>
    %254 = arith.maximumf %252, %253 : vector<16x64xf32>
    %255 = arith.truncf %254 : vector<16x64xf32> to vector<16x64xbf16>
    %256 = vector.extract_strided_slice %249 {offsets = [32, 0], sizes = [64, 32], strides = [1, 1]} : vector<96x64xbf16> to vector<64x32xbf16>
    %cst_68 = arith.constant dense<0.000000e+00> : vector<16x32xf32>
    %257 = tpu.matmul %255, %256, %cst_68 {dimension_numbers = #tpu.dot_dimension_numbers<[1], [0], [0], [1], [0, 0, 1, 1], [], []>} : vector<16x64xbf16>, vector<64x32xbf16>, vector<16x32xf32> -> vector<16x32xf32>
    %258 = arith.addf %257, %248 : vector<16x32xf32>
    %cst_69 = arith.constant dense<0.000000e+00> : vector<16xf32>
    %259 = vector.multi_reduction <add>, %258, %cst_69 [1] : vector<16x32xf32> to vector<16xf32>
    %260 = vector.shape_cast %259 : vector<16xf32> to vector<16x1xf32>
    %cst_70 = arith.constant 3.200000e+01 : f32
    %261 = vector.broadcast %cst_70 : f32 to vector<16x1xf32>
    %262 = arith.divf %260, %261 : vector<16x1xf32>
    %263 = vector.broadcast %262 : vector<16x1xf32> to vector<16x32xf32>
    %264 = arith.subf %258, %263 : vector<16x32xf32>
    %265 = arith.mulf %264, %264 : vector<16x32xf32>
    %cst_71 = arith.constant dense<0.000000e+00> : vector<16xf32>
    %266 = vector.multi_reduction <add>, %265, %cst_71 [1] : vector<16x32xf32> to vector<16xf32>
    %267 = vector.shape_cast %266 : vector<16xf32> to vector<16x1xf32>
    %cst_72 = arith.constant 3.200000e+01 : f32
    %268 = vector.broadcast %cst_72 : f32 to vector<16x1xf32>
    %269 = arith.divf %267, %268 : vector<16x1xf32>
    %cst_73 = arith.constant 9.99999974E-6 : f32
    %270 = vector.broadcast %cst_73 : f32 to vector<16x1xf32>
    %271 = arith.addf %269, %270 : vector<16x1xf32>
    %272 = math.rsqrt %271 : vector<16x1xf32>
    %273 = vector.broadcast %272 : vector<16x1xf32> to vector<16x32xf32>
    %274 = arith.mulf %264, %273 : vector<16x32xf32>
    %c0_74 = arith.constant 0 : index
    %c0_75 = arith.constant 0 : index
    %275 = vector.load %arg5[%c0_74, %c0_75] : memref<16x32xf32, #tpu.memory_space<vmem>>, vector<16x32xf32>
    tpu.vector_store %arg5[%c0_74, %c0_75], %274 {strides = array<i32>} : memref<16x32xf32, #tpu.memory_space<vmem>>, vector<16x32xf32>,
    return
  }
}

</mosaic_0001>

<bundles_post_ra>
// kernel: decoder_layer.1
= control target key start
LH: loop header
LB: loop body
LE: loop exit
PB: predicated region body
PF: predicated region fallthrough
CT: control target
= control target key end

     0   :  { %13 = vsyncpa [#allocation3], 0  ;;  %v3011_v1 = vmov 0.0   ;;  %vm3012_vm0 = vmmov 0   ;;  %vm57_vm1 = vcmask 261120   ;;  %s3653_s0 = inlined_call_operand.vmem [shape: f32[2,8,32], index: 0, kind: input, shape index: {}]   ;;  %s3654_s1 = inlined_call_operand.vmem [shape: f32[2,16,32], index: 1, kind: input, shape index: {}]   ;;  %s3655_s2 = inlined_call_operand.vmem [shape: f32[64,24], index: 2, kind: input, shape index: {}]   ;;  %s3656_s3 = inlined_call_operand.vmem [shape: bf16[2,32,128], index: 3, kind: input, shape index: {}]   ;;  %s3657_s4 = inlined_call_operand.vmem [shape: bf16[96,64], index: 4, kind: input, shape index: {}]   ;;  %s3658_s5 = inlined_call_operand.hbm [shape: f32[16,32], index: 5, kind: output, shape index: {0}]   ;;  %s3659_s6 = inlined_call_operand.hbm [shape: f32[64,8], index: 6, kind: output, shape index: {1}]   ;;  %s3660_s7 = inlined_call_operand.hbm [shape: f32[64,16], index: 7, kind: output, shape index: {2}]  }
   0x1   :  { %v3075_v0 = vld [vmem:[%s3656_s3] sm:$0xff]   ;;  %2552 = vmatprep.subr.bf16.mxu1 %v3011_v1  ;;  %v3081_v2 = vld [vmem:[%s3656_s3 + $0x8] sm:$0xff]   ;;  %2566 = vmatprep.subr.bf16.mxu0 %v3011_v1 }
   0x2   :  { %2553 = vmatpush3.bf16.msra.mxu1 %v3075_v0  ;;  %2556 = vmatprep.mubr.msk.bf16.mxu1 %vm3012_vm0, %v3011_v1  ;;  %v3090_v3 = vld [vmem:[%s3653_s0] sm:$0xff]  ;;  %v3095_v4 = vld [vmem:[%s3653_s0 + $0x8] sm:$0xff] }
   0x3   :  { %2554 = vmatprep.subr.bf16.mxu1 %v3011_v1  ;;  %2568 = vmatprep.mubr.msk.bf16.mxu0 %vm3012_vm0, %v3011_v1  ;;  %v44_v5 = vpack.c.bf16 %v3095_v4, %v3090_v3 }
   0x6   :  { %2555 = vmatpush3.bf16.msra.mxu1 %v3081_v2 }
   0x7   :  { %2560 = vmatprep.subr.bf16.mxu1 %v3011_v1 }
   0x8   :  { %14 = vsyncpa [#allocation5], 0  ;;  %s3013_s0 = smov 80   ;;  %s3014_s9 = smov 96   ;;  %vm106_vm2 = vcmask 64512   ;;  %vm581_vm3 = vcmask 1043456  }
   0x9   :  { %2557 = vmatmul.mubr.msk.bf16.vlgmr.msra.gmra.mrb[0].mxu1 %vm57_vm1, %v44_v5  ;;  %s3015_s10 = smov 120   ;;  %s3016_s11 = smov 88   ;;  %v3182_v38 = vld [vmem:[%s3655_s2] sm:$0xff]  ;;  %v3188_v43 = vld [vmem:[%s3655_s2 + $0x8] sm:$0xff]  ;;  %v3194_v50 = vld [vmem:[%s3655_s2 + $0x10] sm:$0xff]  ;;  %vm785_vm4 = vcmask 130048  }
   0xa   :  { %2562 = vmatprep.mubr.msk.bf16.mxu1 %vm3012_vm0, %v3011_v1  ;;  %s3017_s12 = smov 112   ;;  %s3018_s13 = smov 72   ;;  %v3200_v57 = vld [vmem:[%s3655_s2 + $0x18] sm:$0xff]  ;;  %vm787_vm5 = vcmask 195584   ;;  %vm2290_vm6 = vcmask 523264  }
   0xb   :  { %s3019_s14 = smov 104   ;;  %s3020_s15 = smov 64  }
   0xc   :  { %s3021_s16 = smov 56   ;;  %s3022_s17 = smov 48  }
   0xd   :  { %s3023_s18 = smov 40   ;;  %s3027_s20 = smov 24  }
  0xdc   :  { %v95_v6 = vpop.f32.mrb[0].mxu1 }
  0xdd   :  { %v102_v7 = vpack.c.bf16 %v95_v6, %v95_v6  ;;  %v2558_v8 = vpop.f32.mrb[1].mxu1 }
  0xde   :  { %v98_v9 = vpop.f32.mrb[2].mxu1 }
  0xdf   :  { %205 = vrot.lane.b32.xlu1 %v102_v7, %s3013_s0  ;;  %104 = vrot.lane.b32.xlu0 %v102_v7, %s3014_s9  ;;  %v2559_v10 = vpop.f32.mrb[3].mxu1  ;;  %v3113_v11 = vpack.c.bf16 %v98_v9, %v98_v9 }
  0xe3   :  { %153 = vrot.lane.b32.xlu1 %v102_v7, %s3015_s10  ;;  %155 = vrot.lane.b32.xlu0 %v102_v7, %s3016_s11 }
  0xe7   :  { %203 = vrot.lane.b32.xlu1 %v102_v7, %s3017_s12  ;;  %255 = vrot.lane.b32.xlu0 %v102_v7, %s3018_s13 }
  0xeb   :  { %253 = vrot.lane.b32.xlu1 %v102_v7, %s3019_s14  ;;  %305 = vrot.lane.b32.xlu0 %v3113_v11, %s3014_s9 }
  0xef   :  { %405 = vrot.lane.b32.xlu1 %v3113_v11, %s3013_s0  ;;  %355 = vrot.lane.b32.xlu0 %v3113_v11, %s3016_s11 }
  0xf3   :  { %455 = vrot.lane.b32.xlu1 %v3113_v11, %s3018_s13  ;;  %353 = vrot.lane.b32.xlu0 %v3113_v11, %s3015_s10 }
  0xf7   :  { %453 = vrot.lane.b32.xlu1 %v3113_v11, %s3019_s14  ;;  %403 = vrot.lane.b32.xlu0 %v3113_v11, %s3017_s12 }
  0xfb   :  { %576 = vrot.lane.b32.xlu1 %v102_v7, %s3020_s15  ;;  %626 = vrot.lane.b32.xlu0 %v102_v7, %s3021_s16 }
  0xff   :  { %675 = vrot.lane.b32.xlu1 %v102_v7, %s3022_s17 }
 0x103   :  { %724 = vrot.lane.b32.xlu1 %v102_v7, %s3023_s18 }
 0x151   :  { %v206_v12 = vpop.permute.xlu1 %205  ;;  %v105_v13 = vpop.permute.xlu0 %104 }
 0x152   :  { %v111_v14 = vsel %vm106_vm2, %v105_v13, 0  ;;  %v211_v20 = vsel %vm106_vm2, %v206_v12, 0 }
 0x153   :  { %2561 = vmatpush3.bf16.xpose.msra.mxu1 %v111_v14 }
 0x154   :  { %2572 = vmatprep.subr.bf16.mxu1 %v3011_v1 }
 0x155   :  { %v154_v15 = vpop.permute.xlu1 %153  ;;  %v156_v16 = vpop.permute.xlu0 %155 }
 0x156   :  { %v161_v17 = vsel %vm106_vm2, %v156_v16, 0 }
 0x157   :  { %2567 = vmatpush3.bf16.xpose.msra.mxu0 %v161_v17 }
 0x158   :  { %2578 = vmatprep.subr.bf16.mxu0 %v3011_v1 }
 0x159   :  { %v204_v18 = vpop.permute.xlu1 %203  ;;  %v256_v19 = vpop.permute.xlu0 %255 }
 0x15a   :  { %2563 = vmatmul.mubr.msk.bf16.vlgmr.msra.gmra.mrb[4].mxu1 %vm106_vm2, %v102_v7  ;;  %v261_v23 = vsel %vm106_vm2, %v256_v19, 0 }
 0x15b   :  { %2573 = vmatpush3.bf16.xpose.msra.mxu1 %v211_v20  ;;  %2574 = vmatprep.mubr.msk.bf16.mxu1 %vm3012_vm0, %v3011_v1 }
 0x15c   :  { %2584 = vmatprep.subr.bf16.mxu1 %v3011_v1 }
 0x15d   :  { %v254_v21 = vpop.permute.xlu1 %253  ;;  %v306_v22 = vpop.permute.xlu0 %305 }
 0x15e   :  { %2569 = vmatmul.mubr.msk.bf16.vlgmr.msra.gmra.mrb[0].mxu0 %vm106_vm2, %v154_v15  ;;  %v311_v26 = vsel %vm106_vm2, %v306_v22, 0 }
 0x15f   :  { %2579 = vmatpush3.bf16.xpose.msra.mxu0 %v261_v23  ;;  %2580 = vmatprep.mubr.msk.bf16.mxu0 %vm3012_vm0, %v3011_v1 }
 0x160   :  { %2590 = vmatprep.subr.bf16.mxu0 %v3011_v1 }
 0x161   :  { %v406_v24 = vpop.permute.xlu1 %405  ;;  %v356_v25 = vpop.permute.xlu0 %355 }
 0x162   :  { %2575 = vmatmul.mubr.msk.bf16.vlgmr.msra.gmra.mrb[8].mxu1 %vm106_vm2, %v204_v18  ;;  %v361_v28 = vsel %vm106_vm2, %v356_v25, 0  ;;  %v411_v31 = vsel %vm106_vm2, %v406_v24, 0 }
 0x163   :  { %2585 = vmatpush3.bf16.xpose.msra.mxu1 %v311_v26  ;;  %2586 = vmatprep.mubr.msk.bf16.mxu1 %vm3012_vm0, %v3011_v1 }
 0x164   :  { %2596 = vmatprep.subr.bf16.mxu1 %v3011_v1 }
 0x165   :  { %v456_v27 = vpop.permute.xlu1 %455  ;;  %v354_v29 = vpop.permute.xlu0 %353 }
 0x166   :  { %2581 = vmatmul.mubr.msk.bf16.vlgmr.msra.gmra.mrb[4].mxu0 %vm106_vm2, %v254_v21  ;;  %v461_v33 = vsel %vm106_vm2, %v456_v27, 0 }
 0x167   :  { %2591 = vmatpush3.bf16.xpose.msra.mxu0 %v361_v28  ;;  %2592 = vmatprep.mubr.msk.bf16.mxu0 %vm3012_vm0, %v3011_v1 }
 0x168   :  { %2602 = vmatprep.subr.bf16.mxu0 %v3011_v1 }
 0x169   :  { %v454_v30 = vpop.permute.xlu1 %453  ;;  %v404_v32 = vpop.permute.xlu0 %403 }
 0x16a   :  { %2587 = vmatmul.mubr.msk.bf16.vlgmr.msra.gmra.mrb[12].mxu1 %vm106_vm2, %v3113_v11 }
 0x16b   :  { %2597 = vmatpush3.bf16.xpose.msra.mxu1 %v411_v31  ;;  %2598 = vmatprep.mubr.msk.bf16.mxu1 %vm3012_vm0, %v3011_v1 }
 0x16c   :  { %2608 = vmatprep.subr.bf16.mxu1 %v3011_v1 }
 0x16d   :  { %v577_v34 = vpop.permute.xlu1 %576  ;;  %v627_v36 = vpop.permute.xlu0 %626 }
 0x16e   :  { %2593 = vmatmul.mubr.msk.bf16.vlgmr.msra.gmra.mrb[8].mxu0 %vm106_vm2, %v354_v29  ;;  %v583_v35 = vsel %vm581_vm3, %v577_v34, 0  ;;  %v632_v37 = vsel %vm581_vm3, %v627_v36, 0  ;;  %v3232_v34 = vld [vmem:[%s3655_s2 + $0x30] sm:$0xff] }
 0x16f   :  { %2603 = vmatpush3.bf16.xpose.msra.mxu0 %v461_v33  ;;  %2604 = vmatprep.mubr.msk.bf16.mxu0 %vm3012_vm0, %v3011_v1 }
 0x170   :  { %2614 = vmatprep.subr.bf16.mxu0 %v3011_v1 }
 0x172   :  { %2599 = vmatmul.mubr.msk.bf16.vlgmr.msra.gmra.mrb[16].mxu1 %vm106_vm2, %v404_v32  ;;  %v3224_v32 = vld [vmem:[%s3655_s2 + $0x20] sm:$0xff] }
 0x173   :  { %2609 = vmatpush3.bf16.msra.mxu1 %v583_v35  ;;  %2610 = vmatprep.mubr.msk.bf16.mxu1 %vm3012_vm0, %v3011_v1 }
 0x174   :  { %2620 = vmatprep.subr.bf16.mxu1 %v3011_v1 }
 0x176   :  { %2605 = vmatmul.mubr.msk.bf16.vlgmr.msra.gmra.mrb[12].mxu0 %vm106_vm2, %v454_v30 }
 0x177   :  { %2615 = vmatpush3.bf16.msra.mxu0 %v632_v37  ;;  %2616 = vmatprep.mubr.msk.bf16.mxu0 %vm3012_vm0, %v3011_v1  ;;  %v3238_v37 = vld [vmem:[%s3655_s2 + $0x28] sm:$0xff] }
 0x178   :  { %2626 = vmatprep.subr.bf16.mxu0 %v3011_v1 }
 0x22d   :  { %v147_v39 = vpop.f32.mrb[4].mxu1 }
 0x22e   :  { %v503_v40 = vadd.f32 %v147_v39, %v3182_v38  ;;  %v2564_v41 = vpop.f32.mrb[5].mxu1 }
 0x22f   :  { %v150_v42 = vpop.f32.mrb[6].mxu1  ;;  %v3244_v41 = vld [vmem:[%s3655_s2 + $0x38] sm:$0xff]  ;;  %s3024_s2 = smov 32  }
 0x230   :  { %v511_v44 = vmul.f32 1.442695, %v503_v40  ;;  %v2565_v45 = vpop.f32.mrb[7].mxu1 }
 0x231   :  { %v197_v46 = vpop.f32.mrb[0].mxu0 }
 0x232   :  { %2865 = vpow2.f32 %v511_v44  ;;  %v504_v47 = vadd.f32 %v197_v46, %v3188_v43  ;;  %v2570_v48 = vpop.f32.mrb[1].mxu0 }
 0x233   :  { %v200_v49 = vpop.f32.mrb[2].mxu0 }
 0x234   :  { %v513_v51 = vmul.f32 1.442695, %v504_v47  ;;  %v2571_v52 = vpop.f32.mrb[3].mxu0 }
 0x235   :  { %v247_v53 = vpop.f32.mrb[8].mxu1 }
 0x236   :  { %2867 = vpow2.f32 %v513_v51  ;;  %v505_v54 = vadd.f32 %v247_v53, %v3194_v50  ;;  %v2576_v55 = vpop.f32.mrb[9].mxu1 }
 0x237   :  { %v250_v56 = vpop.f32.mrb[10].mxu1  ;;  %v676_v55 = vpop.permute.xlu1 %675 }
 0x238   :  { %v515_v58 = vmul.f32 1.442695, %v505_v54  ;;  %v2577_v59 = vpop.f32.mrb[11].mxu1 }
 0x239   :  { %v297_v60 = vpop.f32.mrb[4].mxu0 }
 0x23a   :  { %2869 = vpow2.f32 %v515_v58  ;;  %v506_v61 = vadd.f32 %v297_v60, %v3200_v57  ;;  %v2582_v62 = vpop.f32.mrb[5].mxu0 }
 0x23b   :  { %v300_v63 = vpop.f32.mrb[6].mxu0  ;;  %v725_v56 = vpop.permute.xlu1 %724 }
 0x23c   :  { %v3203_v5 = vpop.eup %2865  ;;  %v517_v6 = vmul.f32 1.442695, %v506_v61  ;;  %v2583_v7 = vpop.f32.mrb[7].mxu0 }
 0x23d   :  { %v347_v8 = vpop.f32.mrb[12].mxu1  ;;  %v527_v9 = vsel %vm106_vm2, %v3203_v5, 0.0 }
 0x23e   :  { %2871 = vpow2.f32 %v517_v6  ;;  %528 = vadd.xlane.f32.xlu0 %v527_v9  ;;  %v2588_v10 = vpop.f32.mrb[13].mxu1  ;;  %v507_v33 = vadd.f32 %v347_v8, %v3224_v32  ;;  %v681_v8 = vsel %vm581_vm3, %v676_v55, 0 }
 0x23f   :  { %v350_v12 = vpop.f32.mrb[14].mxu1  ;;  %v730_v10 = vsel %vm581_vm3, %v725_v56, 0 }
 0x240   :  { %v3207_v13 = vpop.eup %2867  ;;  %v2589_v14 = vpop.f32.mrb[15].mxu1  ;;  %v519_v35 = vmul.f32 1.442695, %v507_v33 }
 0x241   :  { %v397_v15 = vpop.f32.mrb[8].mxu0  ;;  %v530_v16 = vsel %vm106_vm2, %v3207_v13, 0.0 }
 0x242   :  { %531 = vadd.xlane.f32.xlu1 %v530_v16  ;;  %v2594_v17 = vpop.f32.mrb[9].mxu0  ;;  %2873 = vpow2.f32 %v519_v35  ;;  %v508_v39 = vadd.f32 %v397_v15, %v3238_v37 }
 0x243   :  { %v400_v18 = vpop.f32.mrb[10].mxu0 }
 0x244   :  { %v3211_v19 = vpop.eup %2869  ;;  %v2595_v20 = vpop.f32.mrb[11].mxu0  ;;  %v521_v42 = vmul.f32 1.442695, %v508_v39 }
 0x245   :  { %v447_v21 = vpop.f32.mrb[16].mxu1  ;;  %v533_v22 = vsel %vm106_vm2, %v3211_v19, 0.0 }
 0x246   :  { %534 = vadd.xlane.f32.xlu0 %v533_v22  ;;  %v2600_v23 = vpop.f32.mrb[17].mxu1  ;;  %v509_v36 = vadd.f32 %v447_v21, %v3232_v34 }
 0x247   :  { %v450_v24 = vpop.f32.mrb[18].mxu1 }
 0x248   :  { %v3215_v25 = vpop.eup %2871  ;;  %v2601_v26 = vpop.f32.mrb[19].mxu1  ;;  %v523_v40 = vmul.f32 1.442695, %v509_v36 }
 0x249   :  { %v497_v27 = vpop.f32.mrb[12].mxu0  ;;  %v536_v28 = vsel %vm106_vm2, %v3215_v25, 0.0 }
 0x24a   :  { %v2606_v29 = vpop.f32.mrb[13].mxu0  ;;  %537 = vadd.xlane.f32.xlu0 %v536_v28  ;;  %2875 = vpow2.f32 %v523_v40  ;;  %v510_v44 = vadd.f32 %v497_v27, %v3244_v41 }
 0x24b   :  { %v500_v30 = vpop.f32.mrb[14].mxu0  ;;  %2877 = vpow2.f32 %v521_v42 }
 0x24c   :  { %v2607_v31 = vpop.f32.mrb[15].mxu0  ;;  %v525_v45 = vmul.f32 1.442695, %v510_v44  ;;  %v3247_v46 = vpop.eup %2873 }
 0x24d   :  { %v539_v47 = vsel %vm106_vm2, %v3247_v46, 0.0 }
 0x24e   :  { %2879 = vpow2.f32 %v525_v45 }
 0x253   :  { %839 = vrot.lane.b32.xlu1 %v3113_v11, %s3021_s16 }
 0x254   :  { %v3251_v48 = vpop.eup %2875 }
 0x255   :  { %v545_v49 = vsel %vm106_vm2, %v3251_v48, 0.0  ;;  %v3255_v51 = vpop.eup %2877 }
 0x256   :  { %v542_v52 = vsel %vm106_vm2, %v3255_v51, 0.0 }
 0x258   :  { %v3259_v53 = vpop.eup %2879 }
 0x259   :  { %v548_v54 = vsel %vm106_vm2, %v3259_v53, 0.0 }
 0x260   :  { %790 = vrot.lane.b32.xlu0 %v3113_v11, %s3020_s15 }
 0x277   :  { %540 = vadd.xlane.f32.xlu1 %v539_v47 }
 0x27b   :  { %546 = vadd.xlane.f32.xlu1 %v545_v49 }
 0x27f   :  { %543 = vadd.xlane.f32.xlu0 %v542_v52 }
 0x283   :  { %549 = vadd.xlane.f32.xlu0 %v548_v54 }
 0x28c   :  { %937 = vrot.lane.b32.xlu1 %v3113_v11, %s3023_s18  ;;  %s3026_s18 = smov 16  }
 0x299   :  { %888 = vrot.lane.b32.xlu0 %v3113_v11, %s3022_s17  ;;  %s3025_s17 = smov 8  }
 0x29d   :  { %1001 = vrot.lane.b32.xlu0 %v3075_v0, %s3024_s2 }
 0x2cb   :  { %v529_v58 = vpop.xlane.xlu0 %528 }
 0x2cc   :  { %2881 = vrcp.f32 %v529_v58 }
 0x2cf   :  { %v532_v59 = vpop.xlane.xlu1 %531 }
 0x2d0   :  { %2883 = vrcp.f32 %v532_v59 }
 0x2d3   :  { %v535_v60 = vpop.xlane.xlu0 %534  ;;  %v840_v18 = vpop.permute.xlu1 %839 }
 0x2d4   :  { %2885 = vrcp.f32 %v535_v60  ;;  %v845_v20 = vsel %vm581_vm3, %v840_v18, 0 }
 0x2d6   :  { %v2882_v61 = vpop.eup %2881 }
 0x2d7   :  { %v559_v62 = vmul.f32 %v2882_v61, %v3203_v5  ;;  %v538_v63 = vpop.xlane.xlu0 %537 }
 0x2d8   :  { %2887 = vrcp.f32 %v538_v63 }
 0x2d9   :  { %567 = vst.msk [vmem:[#allocation4] sm:$0xff] %vm106_vm2, %v559_v62  ;;  %v575_v6 = vpack.c.bf16 %v559_v62, %v559_v62 }
 0x2da   :  { %v2884_v7 = vpop.eup %2883 }
 0x2db   :  { %v560_v11 = vmul.f32 %v2884_v7, %v3207_v13  ;;  %2611 = vmatmul.mubr.msk.bf16.vlgmr.msra.gmra.mrb[20].mxu1 %vm106_vm2, %v575_v6  ;;  %v791_v14 = vpop.permute.xlu0 %790 }
 0x2dc   :  { %2621 = vmatpush3.bf16.msra.mxu1 %v681_v8  ;;  %2622 = vmatprep.mubr.msk.bf16.mxu1 %vm3012_vm0, %v3011_v1  ;;  %v796_v17 = vsel %vm581_vm3, %v791_v14, 0 }
 0x2dd   :  { %568 = vst.msk [vmem:[#allocation4 + $0x8] sm:$0xff] %vm106_vm2, %v560_v11  ;;  %v625_v9 = vpack.c.bf16 %v560_v11, %v560_v11  ;;  %2632 = vmatprep.subr.bf16.mxu1 %v3011_v1 }
 0x2de   :  { %v2886_v5 = vpop.eup %2885 }
 0x2df   :  { %v561_v12 = vmul.f32 %v2886_v5, %v3211_v19  ;;  %2617 = vmatmul.mubr.msk.bf16.vlgmr.msra.gmra.mrb[16].mxu0 %vm106_vm2, %v625_v9 }
 0x2e0   :  { %2627 = vmatpush3.bf16.msra.mxu0 %v730_v10  ;;  %2628 = vmatprep.mubr.msk.bf16.mxu0 %vm3012_vm0, %v3011_v1 }
 0x2e1   :  { %569 = vst.msk [vmem:[#allocation4 + $0x10] sm:$0xff] %vm106_vm2, %v561_v12  ;;  %v674_v13 = vpack.c.bf16 %v561_v12, %v561_v12  ;;  %2638 = vmatprep.subr.bf16.mxu0 %v3011_v1 }
 0x2e2   :  { %v2888_v15 = vpop.eup %2887 }
 0x2e3   :  { %v562_v16 = vmul.f32 %v2888_v15, %v3215_v25  ;;  %2623 = vmatmul.mubr.msk.bf16.vlgmr.msra.gmra.mrb[24].mxu1 %vm106_vm2, %v674_v13 }
 0x2e4   :  { %2633 = vmatpush3.bf16.msra.mxu1 %v796_v17  ;;  %2634 = vmatprep.mubr.msk.bf16.mxu1 %vm3012_vm0, %v3011_v1 }
 0x2e5   :  { %570 = vst.msk [vmem:[#allocation4 + $0x18] sm:$0xff] %vm106_vm2, %v562_v16  ;;  %v723_v19 = vpack.c.bf16 %v562_v16, %v562_v16  ;;  %2644 = vmatprep.subr.bf16.mxu1 %v3011_v1 }
 0x2e7   :  { %2629 = vmatmul.mubr.msk.bf16.vlgmr.msra.gmra.mrb[20].mxu0 %vm106_vm2, %v723_v19 }
 0x2e8   :  { %2639 = vmatpush3.bf16.msra.mxu0 %v845_v20  ;;  %2640 = vmatprep.mubr.msk.bf16.mxu0 %vm3012_vm0, %v3011_v1 }
 0x2e9   :  { %2650 = vmatprep.subr.bf16.mxu0 %v3011_v1 }
 0x304   :  { %v541_v21 = vpop.xlane.xlu1 %540 }
 0x305   :  { %2889 = vrcp.f32 %v541_v21 }
 0x308   :  { %v547_v22 = vpop.xlane.xlu1 %546 }
 0x309   :  { %2891 = vrcp.f32 %v547_v22 }
 0x30c   :  { %v544_v23 = vpop.xlane.xlu0 %543  ;;  %v938_v36 = vpop.permute.xlu1 %937 }
 0x30d   :  { %2893 = vrcp.f32 %v544_v23  ;;  %v943_v44 = vsel %vm581_vm3, %v938_v36, 0 }
 0x30f   :  { %v2890_v24 = vpop.eup %2889 }
 0x310   :  { %v563_v25 = vmul.f32 %v2890_v24, %v3247_v46  ;;  %v550_v26 = vpop.xlane.xlu0 %549 }
 0x311   :  { %2895 = vrcp.f32 %v550_v26 }
 0x312   :  { %571 = vst.msk [vmem:[#allocation4 + $0x20] sm:$0xff] %vm106_vm2, %v563_v25  ;;  %v789_v27 = vpack.c.bf16 %v563_v25, %v563_v25 }
 0x313   :  { %v2892_v28 = vpop.eup %2891 }
 0x314   :  { %v565_v29 = vmul.f32 %v2892_v28, %v3251_v48  ;;  %v889_v30 = vpop.permute.xlu0 %888  ;;  %2635 = vmatmul.mubr.msk.bf16.vlgmr.msra.gmra.mrb[28].mxu1 %vm106_vm2, %v789_v27 }
 0x315   :  { %v894_v31 = vsel %vm581_vm3, %v889_v30, 0  ;;  %2646 = vmatprep.mubr.msk.bf16.mxu1 %vm3012_vm0, %v3011_v1 }
 0x316   :  { %573 = vst.msk [vmem:[#allocation4 + $0x30] sm:$0xff] %vm106_vm2, %v565_v29  ;;  %2645 = vmatpush3.bf16.msra.mxu1 %v894_v31  ;;  %v887_v40 = vpack.c.bf16 %v565_v29, %v565_v29 }
 0x317   :  { %v2894_v33 = vpop.eup %2893  ;;  %2656 = vmatprep.subr.bf16.mxu1 %v3011_v1 }
 0x318   :  { %v564_v35 = vmul.f32 %v2894_v33, %v3255_v51  ;;  %v1002_v7 = vpop.permute.xlu0 %1001 }
 0x31a   :  { %572 = vst.msk [vmem:[#allocation4 + $0x28] sm:$0xff] %vm106_vm2, %v564_v35  ;;  %v838_v39 = vpack.c.bf16 %v564_v35, %v564_v35 }
 0x31b   :  { %v2896_v42 = vpop.eup %2895 }
 0x31c   :  { %v566_v45 = vmul.f32 %v2896_v42, %v3259_v53  ;;  %2641 = vmatmul.mubr.msk.bf16.vlgmr.msra.gmra.mrb[24].mxu0 %vm106_vm2, %v838_v39  ;;  %2647 = vmatmul.mubr.msk.bf16.vlgmr.msra.gmra.mrb[32].mxu1 %vm106_vm2, %v887_v40 }
 0x31d   :  { %2651 = vmatpush3.bf16.msra.mxu0 %v943_v44  ;;  %2652 = vmatprep.mubr.msk.bf16.mxu0 %vm3012_vm0, %v3011_v1 }
 0x31e   :  { %574 = vst.msk [vmem:[#allocation4 + $0x38] sm:$0xff] %vm106_vm2, %v566_v45  ;;  %2660 = vmatprep.mubr.msk.bf16.mxu1 %vm3012_vm0, %v3011_v1  ;;  %2664 = vmatprep.subr.bf16.mxu0 %v3011_v1  ;;  %v936_v46 = vpack.c.bf16 %v566_v45, %v566_v45 }
 0x31f   :  { %2657 = vmatpush3.bf16.msra.mxu1 %v1002_v7 }
 0x320   :  { %2658 = vmatprep.subr.bf16.mxu1 %v3011_v1 }
 0x324   :  { %2653 = vmatmul.mubr.msk.bf16.vlgmr.msra.gmra.mrb[28].mxu0 %vm106_vm2, %v936_v46 }
 0x325   :  { %2668 = vmatprep.mubr.msk.bf16.mxu0 %vm3012_vm0, %v3011_v1 }
 0x3ae   :  { %v619_v47 = vpop.f32.mrb[20].mxu1 }
 0x3af   :  { %v2612_v48 = vpop.f32.mrb[21].mxu1 }
 0x3b0   :  { %v622_v49 = vpop.f32.mrb[22].mxu1 }
 0x3b1   :  { %v2613_v51 = vpop.f32.mrb[23].mxu1 }
 0x3b2   :  { %v668_v52 = vpop.f32.mrb[16].mxu0 }
 0x3b3   :  { %v2618_v53 = vpop.f32.mrb[17].mxu0 }
 0x3b4   :  { %v671_v54 = vpop.f32.mrb[18].mxu0 }
 0x3b5   :  { %v2619_v55 = vpop.f32.mrb[19].mxu0 }
 0x3b6   :  { %v717_v56 = vpop.f32.mrb[24].mxu1 }
 0x3b7   :  { %v2624_v58 = vpop.f32.mrb[25].mxu1 }
 0x3b8   :  { %v720_v59 = vpop.f32.mrb[26].mxu1 }
 0x3b9   :  { %v2625_v60 = vpop.f32.mrb[27].mxu1 }
 0x3ba   :  { %v766_v61 = vpop.f32.mrb[20].mxu0 }
 0x3bb   :  { %v2630_v62 = vpop.f32.mrb[21].mxu0 }
 0x3bc   :  { %v769_v63 = vpop.f32.mrb[22].mxu0 }
 0x3bd   :  { %v2631_v6 = vpop.f32.mrb[23].mxu0 }
 0x3e7   :  { %v832_v0 = vpop.f32.mrb[28].mxu1 }
 0x3e8   :  { %v2636_v8 = vpop.f32.mrb[29].mxu1 }
 0x3e9   :  { %v835_v11 = vpop.f32.mrb[30].mxu1  ;;  %v28_v8 = vld [vmem:[%s3654_s1] sm:$0xff] }
 0x3ea   :  { %v2637_v9 = vpop.f32.mrb[31].mxu1  ;;  %v29_v11 = vld [vmem:[%s3654_s1 + $0x8] sm:$0xff] }
 0x3eb   :  { %v1142_v9 = vpack.c.bf16 %v29_v11, %v28_v8 }
 0x3ef   :  { %v881_v5 = vpop.f32.mrb[24].mxu0  ;;  %v930_v10 = vpop.f32.mrb[32].mxu1 }
 0x3f0   :  { %v2825_v12 = vpack.i.bf16 %v881_v5, %v668_v52  ;;  %v2830_v14 = vpack.i.bf16 %v930_v10, %v717_v56  ;;  %v2642_v13 = vpop.f32.mrb[25].mxu0  ;;  %v2648_v15 = vpop.f32.mrb[33].mxu1  ;;  %v3341_v56 = vld [vmem:[%s3656_s3 + $0x10] sm:$0xff]  }
 0x3f1   :  { %v884_v16 = vpop.f32.mrb[26].mxu0  ;;  %v933_v17 = vpop.f32.mrb[34].mxu1  ;;  %2665 = vmatpush3.bf16.msra.mxu0 %v3341_v56 }
 0x3f2   :  { %v2643_v18 = vpop.f32.mrb[27].mxu0  ;;  %2826 = vrot.lane.b32.xlu1 %v2825_v12, %s3025_s17  ;;  %2831 = vrot.lane.b32.xlu0 %v2830_v14, %s3026_s18  ;;  %v2649_v19 = vpop.f32.mrb[35].mxu1 }
 0x3f3   :  { %2666 = vmatprep.subr.bf16.mxu0 %v3011_v1  ;;  %v30_v18 = vld [vmem:[%s3654_s1 + $0x10] sm:$0xff]  ;;  %v31_v19 = vld [vmem:[%s3654_s1 + $0x18] sm:$0xff] }
 0x3f6   :  { %1003 = vrot.lane.b32.xlu0 %v3081_v2, %s3024_s2 }
 0x3f7   :  { %v979_v20 = vpop.f32.mrb[28].mxu0 }
 0x3f8   :  { %v2835_v21 = vpack.i.bf16 %v979_v20, %v766_v61  ;;  %v2654_v22 = vpop.f32.mrb[29].mxu0  ;;  %v1143_v20 = vpack.c.bf16 %v31_v19, %v30_v18 }
 0x3f9   :  { %v982_v23 = vpop.f32.mrb[30].mxu0 }
 0x3fa   :  { %2836 = vrot.lane.b32.xlu1 %v2835_v21, %s3027_s20  ;;  %v2655_v24 = vpop.f32.mrb[31].mxu0 }
 0x464   :  { %v2827_v25 = vpop.permute.xlu1 %2826  ;;  %v2832_v26 = vpop.permute.xlu0 %2831 }
 0x465   :  { %v2829_v27 = vunpack.i.h.bf16 %v2827_v25  ;;  %v2828_v28 = vunpack.i.l.bf16 %v2827_v25  ;;  %v2834_v30 = vunpack.i.h.bf16 %v2832_v26  ;;  %v2833_v31 = vunpack.i.l.bf16 %v2832_v26 }
 0x467   :  { %v784_v33 = vsel %vm106_vm2, %v619_v47, %v2828_v28  ;;  %v997_v2 = vsel %vm106_vm2, %v832_v0, %v2829_v27 }
 0x468   :  { %v1004_v29 = vpop.permute.xlu0 %1003  ;;  %v998_v40 = vsel %vm785_vm4, %v997_v2, %v2834_v30  ;;  %v786_v42 = vsel %vm785_vm4, %v784_v33, %v2833_v31 }
 0x469   :  { %2659 = vmatpush3.bf16.msra.mxu1 %v1004_v29 }
 0x46c   :  { %v2837_v35 = vpop.permute.xlu1 %2836 }
 0x46d   :  { %v2839_v36 = vunpack.i.h.bf16 %v2837_v35  ;;  %v2838_v39 = vunpack.i.l.bf16 %v2837_v35 }
 0x46f   :  { %v788_v44 = vsel %vm787_vm5, %v786_v42, %v2838_v39  ;;  %v999_v45 = vsel %vm787_vm5, %v998_v40, %v2839_v36 }
 0x470   :  { %v1000_v46 = vpack.c.bf16 %v999_v45, %v788_v44 }
 0x472   :  { %2661 = vmatmul.mubr.msk.bf16.vlgmr.msra.gmra.mrb[36].mxu1 %vm57_vm1, %v1000_v46 }
 0x473   :  { %2676 = vmatprep.mubr.msk.bf16.mxu1 %vm57_vm1, %v1142_v9 }
 0x545   :  { %v1044_v48 = vpop.f32.mrb[36].mxu1 }
 0x546   :  { %v1051_v47 = vadd.f32 %v1044_v48, %v3090_v3  ;;  %v2662_v49 = vpop.f32.mrb[37].mxu1  ;;  %v3348_v3 = vld [vmem:[%s3656_s3 + $0x18] sm:$0xff]  }
 0x547   :  { %v1047_v51 = vpop.f32.mrb[38].mxu1  ;;  %2667 = vmatpush3.bf16.msra.mxu0 %v3348_v3 }
 0x548   :  { %v1052_v52 = vadd.f32 %v1047_v51, %v3095_v4  ;;  %v2663_v53 = vpop.f32.mrb[39].mxu1  ;;  %v1053_v54 = vsel %vm57_vm1, %v1051_v47, 0.0  ;;  %2680 = vmatprep.subr.bf16.mxu0 %v3011_v1 }
 0x549   :  { %1054 = vadd.xlane.f32.xlu1 %v1053_v54 }
 0x54a   :  { %v1056_v55 = vsel %vm57_vm1, %v1052_v52, 0.0 }
 0x54b   :  { %1057 = vadd.xlane.f32.xlu0 %v1056_v55 }
 0x5d6   :  { %v1055_v4 = vpop.xlane.xlu1 %1054 }
 0x5d7   :  { %v1060_v58 = vmul.f32 0.03125, %v1055_v4 }
 0x5d8   :  { %v1058_v59 = vpop.xlane.xlu0 %1057 }
 0x5d9   :  { %v1062_v60 = vsub.f32 %v1051_v47, %v1060_v58  ;;  %v1061_v61 = vmul.f32 0.03125, %v1058_v59 }
 0x5db   :  { %v1063_v62 = vsub.f32 %v1052_v52, %v1061_v61  ;;  %v1064_v63 = vmul.f32 %v1062_v60, %v1062_v60 }
 0x5dd   :  { %v1066_v6 = vsel %vm57_vm1, %v1064_v63, 0.0  ;;  %v1065_v7 = vmul.f32 %v1063_v62, %v1063_v62 }
 0x5de   :  { %1067 = vadd.xlane.f32.xlu0 %v1066_v6 }
 0x5df   :  { %v1069_v0 = vsel %vm57_vm1, %v1065_v7, 0.0 }
 0x5e0   :  { %1070 = vadd.xlane.f32.xlu1 %v1069_v0 }
 0x5f1   :  { %1146 = vrot.lane.b32.xlu1 %v3348_v3, %s3014_s9 }
 0x5f4   :  { %1144 = vrot.lane.b32.xlu0 %v3341_v56, %s3014_s9 }
 0x66b   :  { %v1068_v5 = vpop.xlane.xlu0 %1067 }
 0x66c   :  { %v1072_v10 = vmul.f32 0.03125, %v1068_v5 }
 0x66d   :  { %v1071_v12 = vpop.xlane.xlu1 %1070 }
 0x66e   :  { %v1074_v14 = vadd.f32 1e-05, %v1072_v10  ;;  %v1073_v13 = vmul.f32 0.03125, %v1071_v12 }
 0x66f   :  { %v1145_v15 = vpop.permute.xlu0 %1144 }
 0x670   :  { %2897 = vrsqrt.f32 %v1074_v14  ;;  %v1075_v16 = vadd.f32 1e-05, %v1073_v13  ;;  %2672 = vmatprep.subr.bf16.mxu1 %v1145_v15 }
 0x671   :  { %2673 = vmatpush3.bf16.msra.mxu1 %v1145_v15  ;;  %v1147_v17 = vpop.permute.xlu1 %1146 }
 0x672   :  { %2899 = vrsqrt.f32 %v1075_v16  ;;  %2674 = vmatprep.subr.bf16.mxu1 %v1147_v17 }
 0x675   :  { %2675 = vmatpush3.bf16.msra.mxu1 %v1147_v17 }
 0x676   :  { %2686 = vmatprep.subr.bf16.mxu1 %v3011_v1 }
 0x678   :  { %2677 = vmatmul.mubr.msk.bf16.vlgmr.msra.gmra.mrb[40].mxu1 %vm57_vm1, %v1143_v20 }
 0x679   :  { %2688 = vmatprep.mubr.msk.bf16.mxu1 %vm3012_vm0, %v3011_v1 }
 0x67a   :  { %v2898_v21 = vpop.eup %2897 }
 0x67b   :  { %v3375_v23 = vmul.f32 %v2898_v21, %v1062_v60 }
 0x67c   :  { %v2900_v22 = vpop.eup %2899 }
 0x67d   :  { %v3377_v24 = vmul.f32 %v2900_v22, %v1063_v62 }
 0x67f   :  { %v1085_v25 = vpack.c.bf16 %v3377_v24, %v3375_v23 }
 0x681   :  { %2669 = vmatmul.mubr.msk.bf16.vlgmr.msra.gmra.mrb[32].mxu0 %vm57_vm1, %v1085_v25 }
 0x682   :  { %2682 = vmatprep.mubr.msk.bf16.mxu0 %vm3012_vm0, %v3011_v1 }
 0x74b   :  { %v2678_v26 = vpop.f32.mrb[40].mxu1 }
 0x74c   :  { %v1190_v27 = vpop.f32.mrb[41].mxu1 }
 0x74d   :  { %v2679_v28 = vpop.f32.mrb[42].mxu1 }
 0x74e   :  { %v3384_v29 = vpack.c.bf16 %v2679_v28, %v2678_v26  ;;  %v1193_v30 = vpop.f32.mrb[43].mxu1 }
 0x74f   :  { %v1206_v31 = vpack.c.bf16 %v1193_v30, %v1190_v27 }
 0x750   :  { %v1411_v45 = vsel %vm106_vm2, %v3384_v29, 0 }
 0x751   :  { %1307 = vrot.lane.b32.xlu0 %v1206_v31, %s3017_s12  ;;  %1257 = vrot.lane.b32.xlu1 %v1206_v31, %s3015_s10  ;;  %v1211_v33 = vsel %vm106_vm2, %v1206_v31, 0 }
 0x752   :  { %2681 = vmatpush3.bf16.xpose.msra.mxu0 %v1211_v33 }
 0x753   :  { %2692 = vmatprep.subr.bf16.mxu0 %v3011_v1 }
 0x754   :  { %v1135_v2 = vpop.f32.mrb[32].mxu0 }
 0x755   :  { %v1205_v35 = vpack.c.bf16 %v1135_v2, %v1135_v2  ;;  %v2670_v36 = vpop.f32.mrb[33].mxu0  ;;  %1357 = vrot.lane.b32.xlu0 %v1206_v31, %s3019_s14 }
 0x756   :  { %v1138_v39 = vpop.f32.mrb[34].mxu0 }
 0x757   :  { %v2671_v40 = vpop.f32.mrb[35].mxu0  ;;  %1254 = vrot.lane.b32.xlu1 %v1205_v35, %s3015_s10  ;;  %v1405_v42 = vpack.c.bf16 %v1138_v39, %v1138_v39 }
 0x759   :  { %1355 = vrot.lane.b32.xlu0 %v1205_v35, %s3019_s14  ;;  %2683 = vmatmul.mubr.msk.bf16.vlgmr.msra.gmra.mrb[36].mxu0 %vm106_vm2, %v1205_v35 }
 0x75a   :  { %2694 = vmatprep.mubr.msk.bf16.mxu0 %vm3012_vm0, %v3011_v1 }
 0x75b   :  { %1305 = vrot.lane.b32.xlu1 %v1205_v35, %s3017_s12 }
 0x75d   :  { %1507 = vrot.lane.b32.xlu0 %v3384_v29, %s3017_s12 }
 0x75f   :  { %1457 = vrot.lane.b32.xlu1 %v3384_v29, %s3015_s10 }
 0x761   :  { %1557 = vrot.lane.b32.xlu0 %v3384_v29, %s3019_s14 }
 0x763   :  { %1454 = vrot.lane.b32.xlu1 %v1405_v42, %s3015_s10 }
 0x765   :  { %1555 = vrot.lane.b32.xlu0 %v1405_v42, %s3019_s14 }
 0x767   :  { %1505 = vrot.lane.b32.xlu1 %v1405_v42, %s3017_s12 }
 0x769   :  { %1615 = vrot.lane.b32.xlu0 %v3188_v43, %s3015_s10 }
 0x76b   :  { %1613 = vrot.lane.b32.xlu1 %v3182_v38, %s3015_s10 }
 0x76d   :  { %1619 = vrot.lane.b32.xlu0 %v3200_v57, %s3015_s10 }
 0x76f   :  { %1617 = vrot.lane.b32.xlu1 %v3194_v50, %s3015_s10 }
 0x771   :  { %1623 = vrot.lane.b32.xlu0 %v3238_v37, %s3015_s10 }
 0x773   :  { %1621 = vrot.lane.b32.xlu1 %v3224_v32, %s3015_s10 }
 0x775   :  { %1627 = vrot.lane.b32.xlu0 %v3244_v41, %s3015_s10 }
 0x777   :  { %1625 = vrot.lane.b32.xlu1 %v3232_v34, %s3015_s10 }
 0x779   :  { %1710 = vrot.lane.b32.xlu0 %v1206_v31, %s3014_s9 }
 0x77b   :  { %1757 = vrot.lane.b32.xlu1 %v1206_v31, %s3016_s11 }
 0x77d   :  { %1851 = vrot.lane.b32.xlu0 %v1206_v31, %s3018_s13 }
 0x77f   :  { %1804 = vrot.lane.b32.xlu1 %v1206_v31, %s3013_s0 }
 0x7c3   :  { %v1308_v38 = vpop.permute.xlu0 %1307  ;;  %v1258_v43 = vpop.permute.xlu1 %1257 }
 0x7c4   :  { %v1313_v50 = vsel %vm106_vm2, %v1308_v38, 0  ;;  %v1263_v57 = vsel %vm106_vm2, %v1258_v43, 0 }
 0x7c5   :  { %2687 = vmatpush3.bf16.xpose.msra.mxu1 %v1263_v57  ;;  %2693 = vmatpush3.bf16.xpose.msra.mxu0 %v1313_v50 }
 0x7c6   :  { %2698 = vmatprep.subr.bf16.mxu1 %v3011_v1  ;;  %2704 = vmatprep.subr.bf16.mxu0 %v3011_v1 }
 0x7c7   :  { %v1358_v32 = vpop.permute.xlu0 %1357 }
 0x7c8   :  { %v1363_v41 = vsel %vm106_vm2, %v1358_v32, 0 }
 0x7c9   :  { %v1255_v34 = vpop.permute.xlu1 %1254 }
 0x7cb   :  { %v1356_v37 = vpop.permute.xlu0 %1355 }
 0x7cc   :  { %2689 = vmatmul.mubr.msk.bf16.vlgmr.msra.gmra.mrb[44].mxu1 %vm106_vm2, %v1255_v34 }
 0x7cd   :  { %2699 = vmatpush3.bf16.xpose.msra.mxu1 %v1363_v41  ;;  %v1306_v44 = vpop.permute.xlu1 %1305  ;;  %2700 = vmatprep.mubr.msk.bf16.mxu1 %vm3012_vm0, %v3011_v1 }
 0x7ce   :  { %2695 = vmatmul.mubr.msk.bf16.vlgmr.msra.gmra.mrb[40].mxu0 %vm106_vm2, %v1306_v44  ;;  %2710 = vmatprep.subr.bf16.mxu1 %v3011_v1 }
 0x7cf   :  { %2705 = vmatpush3.bf16.xpose.msra.mxu0 %v1411_v45  ;;  %v1508_v46 = vpop.permute.xlu0 %1507  ;;  %2706 = vmatprep.mubr.msk.bf16.mxu0 %vm3012_vm0, %v3011_v1 }
 0x7d0   :  { %2716 = vmatprep.subr.bf16.mxu0 %v3011_v1  ;;  %v1513_v52 = vsel %vm106_vm2, %v1508_v46, 0 }
 0x7d1   :  { %v1458_v48 = vpop.permute.xlu1 %1457 }
 0x7d2   :  { %v1463_v49 = vsel %vm106_vm2, %v1458_v48, 0 }
 0x7d3   :  { %v1558_v47 = vpop.permute.xlu0 %1557 }
 0x7d4   :  { %2701 = vmatmul.mubr.msk.bf16.vlgmr.msra.gmra.mrb[48].mxu1 %vm106_vm2, %v1356_v37  ;;  %v1563_v4 = vsel %vm106_vm2, %v1558_v47, 0 }
 0x7d5   :  { %2711 = vmatpush3.bf16.xpose.msra.mxu1 %v1463_v49  ;;  %v1455_v51 = vpop.permute.xlu1 %1454  ;;  %2712 = vmatprep.mubr.msk.bf16.mxu1 %vm3012_vm0, %v3011_v1 }
 0x7d6   :  { %2707 = vmatmul.mubr.msk.bf16.vlgmr.msra.gmra.mrb[44].mxu0 %vm106_vm2, %v1405_v42  ;;  %2722 = vmatprep.subr.bf16.mxu1 %v3011_v1 }
 0x7d7   :  { %2717 = vmatpush3.bf16.xpose.msra.mxu0 %v1513_v52  ;;  %v1556_v53 = vpop.permute.xlu0 %1555  ;;  %2718 = vmatprep.mubr.msk.bf16.mxu0 %vm3012_vm0, %v3011_v1 }
 0x7d8   :  { %2728 = vmatprep.subr.bf16.mxu0 %v3011_v1 }
 0x7d9   :  { %v1506_v54 = vpop.permute.xlu1 %1505 }
 0x7db   :  { %v1616_v55 = vpop.permute.xlu0 %1615 }
 0x7dc   :  { %2713 = vmatmul.mubr.msk.bf16.vlgmr.msra.gmra.mrb[52].mxu1 %vm106_vm2, %v1455_v51 }
 0x7dd   :  { %2723 = vmatpush3.bf16.xpose.msra.mxu1 %v1563_v4  ;;  %v1614_v58 = vpop.permute.xlu1 %1613  ;;  %2724 = vmatprep.mubr.msk.bf16.mxu1 %vm3012_vm0, %v3011_v1 }
 0x7de   :  { %2719 = vmatmul.mubr.msk.bf16.vlgmr.msra.gmra.mrb[48].mxu0 %vm106_vm2, %v1506_v54  ;;  %2734 = vmatprep.subr.bf16.mxu1 %v3011_v1 }
 0x7df   :  { %v1620_v59 = vpop.permute.xlu0 %1619  ;;  %2730 = vmatprep.mubr.msk.bf16.mxu0 %vm3012_vm0, %v3011_v1 }
 0x7e1   :  { %v1618_v60 = vpop.permute.xlu1 %1617 }
 0x7e3   :  { %v1624_v61 = vpop.permute.xlu0 %1623 }
 0x7e4   :  { %2725 = vmatmul.mubr.msk.bf16.vlgmr.msra.gmra.mrb[56].mxu1 %vm106_vm2, %v1556_v53 }
 0x7e5   :  { %v3460_v62 = vpop.permute.xlu1 %1621  ;;  %2736 = vmatprep.mubr.msk.bf16.mxu1 %vm3012_vm0, %v3011_v1 }
 0x7e7   :  { %v3464_v63 = vpop.permute.xlu0 %1627 }
 0x7e9   :  { %v3466_v6 = vpop.permute.xlu1 %1625 }
 0x7eb   :  { %v1711_v7 = vpop.permute.xlu0 %1710 }
 0x7ec   :  { %2729 = vmatpush3.bf16.msra.mxu0 %v1711_v7 }
 0x7ed   :  { %v1758_v0 = vpop.permute.xlu1 %1757  ;;  %2740 = vmatprep.subr.bf16.mxu0 %v3011_v1 }
 0x7ee   :  { %2735 = vmatpush3.bf16.msra.mxu1 %v1758_v0 }
 0x7ef   :  { %2746 = vmatprep.subr.bf16.mxu1 %v3011_v1 }
 0x82c   :  { %v1247_v8 = vpop.f32.mrb[36].mxu0 }
 0x82d   :  { %v1637_v11 = vadd.f32 %v1614_v58, %v1247_v8  ;;  %v2684_v9 = vpop.f32.mrb[37].mxu0  ;;  %v1805_v8 = vpop.permute.xlu1 %1804 }
 0x82e   :  { %v1250_v5 = vpop.f32.mrb[38].mxu0 }
 0x82f   :  { %v1645_v10 = vmul.f32 1.442695, %v1637_v11  ;;  %v2685_v12 = vpop.f32.mrb[39].mxu0 }
 0x831   :  { %2901 = vpow2.f32 %v1645_v10 }
 0x83b   :  { %v3470_v14 = vpop.eup %2901 }
 0x83c   :  { %v1661_v13 = vsel %vm785_vm4, %v3470_v14, 0.0 }
 0x83d   :  { %1662 = vadd.xlane.f32.xlu1 %v1661_v13 }
 0x84e   :  { %1913 = vrot.lane.b32.xlu1 %v3384_v29, %s3014_s9 }
 0x89f   :  { %v1299_v15 = vpop.f32.mrb[44].mxu1 }
 0x8a0   :  { %v1638_v16 = vadd.f32 %v1616_v55, %v1299_v15  ;;  %v2690_v17 = vpop.f32.mrb[45].mxu1 }
 0x8a1   :  { %v1302_v18 = vpop.f32.mrb[46].mxu1  ;;  %v1349_v19 = vpop.f32.mrb[40].mxu0 }
 0x8a2   :  { %v1647_v20 = vmul.f32 1.442695, %v1638_v16  ;;  %v1639_v21 = vadd.f32 %v1618_v60, %v1349_v19  ;;  %v2691_v22 = vpop.f32.mrb[47].mxu1  ;;  %v2696_v25 = vpop.f32.mrb[41].mxu0 }
 0x8a3   :  { %v1352_v26 = vpop.f32.mrb[42].mxu0  ;;  %v1852_v18 = vpop.permute.xlu0 %1851 }
 0x8a4   :  { %2903 = vpow2.f32 %v1647_v20  ;;  %v1649_v27 = vmul.f32 1.442695, %v1639_v21  ;;  %v2697_v28 = vpop.f32.mrb[43].mxu0 }
 0x8a6   :  { %2905 = vpow2.f32 %v1649_v27 }
 0x8a7   :  { %v1399_v30 = vpop.f32.mrb[48].mxu1 }
 0x8a8   :  { %v1640_v31 = vadd.f32 %v1620_v59, %v1399_v30  ;;  %v2702_v33 = vpop.f32.mrb[49].mxu1 }
 0x8a9   :  { %v1402_v2 = vpop.f32.mrb[50].mxu1  ;;  %v1447_v35 = vpop.f32.mrb[44].mxu0 }
 0x8aa   :  { %v1651_v36 = vmul.f32 1.442695, %v1640_v31  ;;  %v2703_v39 = vpop.f32.mrb[51].mxu1  ;;  %v2708_v40 = vpop.f32.mrb[45].mxu0  ;;  %v1641_v9 = vadd.f32 %v3460_v62, %v1447_v35 }
 0x8ab   :  { %v1450_v42 = vpop.f32.mrb[46].mxu0 }
 0x8ac   :  { %2907 = vpow2.f32 %v1651_v36  ;;  %v2709_v38 = vpop.f32.mrb[47].mxu0  ;;  %v1653_v12 = vmul.f32 1.442695, %v1641_v9 }
 0x8ae   :  { %v3476_v43 = vpop.eup %2903 }
 0x8af   :  { %v1499_v50 = vpop.f32.mrb[52].mxu1  ;;  %v1664_v57 = vsel %vm785_vm4, %v3476_v43, 0.0 }
 0x8b0   :  { %v3480_v32 = vpop.eup %2905  ;;  %v1642_v34 = vadd.f32 %v1624_v61, %v1499_v50  ;;  %1665 = vadd.xlane.f32.xlu0 %v1664_v57  ;;  %v2714_v37 = vpop.f32.mrb[53].mxu1 }
 0x8b1   :  { %v1502_v41 = vpop.f32.mrb[54].mxu1  ;;  %v1549_v44 = vpop.f32.mrb[48].mxu0  ;;  %v1667_v49 = vsel %vm785_vm4, %v3480_v32, 0.0 }
 0x8b2   :  { %v1655_v45 = vmul.f32 1.442695, %v1642_v34  ;;  %v2715_v46 = vpop.f32.mrb[55].mxu1  ;;  %v2720_v48 = vpop.f32.mrb[49].mxu0  ;;  %v1643_v13 = vadd.f32 %v3466_v6, %v1549_v44 }
 0x8b3   :  { %v1552_v47 = vpop.f32.mrb[50].mxu0 }
 0x8b4   :  { %2909 = vpow2.f32 %v1655_v45  ;;  %1668 = vadd.xlane.f32.xlu0 %v1667_v49  ;;  %v2721_v51 = vpop.f32.mrb[51].mxu0  ;;  %v1657_v16 = vmul.f32 1.442695, %v1643_v13 }
 0x8b6   :  { %v3484_v52 = vpop.eup %2907 }
 0x8b7   :  { %v1599_v53 = vpop.f32.mrb[56].mxu1  ;;  %v1670_v54 = vsel %vm785_vm4, %v3484_v52, 0.0 }
 0x8b8   :  { %v1644_v55 = vadd.f32 %v3464_v63, %v1599_v53  ;;  %v2726_v4 = vpop.f32.mrb[57].mxu1  ;;  %1671 = vadd.xlane.f32.xlu1 %v1670_v54 }
 0x8b9   :  { %v1602_v58 = vpop.f32.mrb[58].mxu1 }
 0x8ba   :  { %v1659_v59 = vmul.f32 1.442695, %v1644_v55  ;;  %v2727_v60 = vpop.f32.mrb[59].mxu1 }
 0x8bc   :  { %2911 = vpow2.f32 %v1659_v59 }
 0x8be   :  { %v3489_v61 = vpop.eup %2909 }
 0x8bf   :  { %v1676_v7 = vsel %vm785_vm4, %v3489_v61, 0.0 }
 0x8c0   :  { %1677 = vadd.xlane.f32.xlu1 %v1676_v7 }
 0x8c6   :  { %v3493_v0 = vpop.eup %2911 }
 0x8c7   :  { %v1682_v11 = vsel %vm785_vm4, %v3493_v0, 0.0 }
 0x8c8   :  { %1683 = vadd.xlane.f32.xlu1 %v1682_v11 }
 0x8ca   :  { %v1663_v63 = vpop.xlane.xlu1 %1662  ;;  %1960 = vrot.lane.b32.xlu0 %v3384_v29, %s3016_s11 }
 0x8cb   :  { %2913 = vrcp.f32 %v1663_v63 }
 0x8cc   :  { %2915 = vpow2.f32 %v1653_v12 }
 0x8cd   :  { %2917 = vpow2.f32 %v1657_v16 }
 0x8ce   :  { %v1914_v20 = vpop.permute.xlu1 %1913 }
 0x8d5   :  { %v2914_v5 = vpop.eup %2913 }
 0x8d6   :  { %v1693_v10 = vmul.f32 %v2914_v5, %v3470_v14  ;;  %v2916_v62 = vpop.eup %2915 }
 0x8d7   :  { %v1673_v6 = vsel %vm785_vm4, %v2916_v62, 0.0  ;;  %v3512_v14 = vpop.eup %2917 }
 0x8d8   :  { %1701 = vst.msk [vmem:[#allocation6] sm:$0xff] %vm785_vm4, %v1693_v10  ;;  %v1709_v15 = vpack.c.bf16 %v1693_v10, %v1693_v10  ;;  %v1679_v17 = vsel %vm785_vm4, %v3512_v14, 0.0 }
 0x8d9   :  { %2007 = vrot.lane.b32.xlu1 %v3384_v29, %s3013_s0 }
 0x8da   :  { %2731 = vmatmul.mubr.msk.bf16.vlgmr.msra.gmra.mrb[52].mxu0 %vm785_vm4, %v1709_v15 }
 0x8db   :  { %2741 = vmatpush3.bf16.msra.mxu0 %v1805_v8  ;;  %2742 = vmatprep.mubr.msk.bf16.mxu0 %vm3012_vm0, %v3011_v1 }
 0x8dc   :  { %2752 = vmatprep.subr.bf16.mxu0 %v3011_v1 }
 0x8dd   :  { %2116 = vrot.lane.b32.xlu1 %v3341_v56, %s3024_s2 }
 0x8e9   :  { %1674 = vadd.xlane.f32.xlu0 %v1673_v6 }
 0x8ed   :  { %1680 = vadd.xlane.f32.xlu0 %v1679_v17 }
 0x903   :  { %2054 = vrot.lane.b32.xlu0 %v3384_v29, %s3018_s13 }
 0x93d   :  { %v1666_v19 = vpop.xlane.xlu0 %1665 }
 0x93e   :  { %2919 = vrcp.f32 %v1666_v19 }
 0x941   :  { %v1669_v21 = vpop.xlane.xlu0 %1668 }
 0x942   :  { %2921 = vrcp.f32 %v1669_v21 }
 0x945   :  { %v1672_v56 = vpop.xlane.xlu1 %1671  ;;  %v1961_v35 = vpop.permute.xlu0 %1960 }
 0x946   :  { %2923 = vrcp.f32 %v1672_v56 }
 0x948   :  { %v2920_v22 = vpop.eup %2919 }
 0x949   :  { %v1694_v25 = vmul.f32 %v2920_v22, %v3476_v43 }
 0x94b   :  { %1702 = vst.msk [vmem:[#allocation6 + $0x8] sm:$0xff] %vm785_vm4, %v1694_v25  ;;  %v1756_v26 = vpack.c.bf16 %v1694_v25, %v1694_v25 }
 0x94c   :  { %v2922_v27 = vpop.eup %2921 }
 0x94d   :  { %v1695_v28 = vmul.f32 %v2922_v27, %v3480_v32  ;;  %2737 = vmatmul.mubr.msk.bf16.vlgmr.msra.gmra.mrb[60].mxu1 %vm785_vm4, %v1756_v26  ;;  %v1678_v29 = vpop.xlane.xlu1 %1677 }
 0x94e   :  { %2747 = vmatpush3.bf16.msra.mxu1 %v1852_v18  ;;  %2925 = vrcp.f32 %v1678_v29  ;;  %2748 = vmatprep.mubr.msk.bf16.mxu1 %vm3012_vm0, %v3011_v1 }
 0x94f   :  { %1703 = vst.msk [vmem:[#allocation6 + $0x10] sm:$0xff] %vm785_vm4, %v1695_v28  ;;  %v1803_v30 = vpack.c.bf16 %v1695_v28, %v1695_v28  ;;  %2758 = vmatprep.subr.bf16.mxu1 %v3011_v1 }
 0x950   :  { %v2924_v31 = vpop.eup %2923 }
 0x951   :  { %v1696_v33 = vmul.f32 %v2924_v31, %v3484_v52  ;;  %2743 = vmatmul.mubr.msk.bf16.vlgmr.msra.gmra.mrb[56].mxu0 %vm785_vm4, %v1803_v30 }
 0x952   :  { %2753 = vmatpush3.bf16.msra.mxu0 %v1914_v20  ;;  %2754 = vmatprep.mubr.msk.bf16.mxu0 %vm3012_vm0, %v3011_v1 }
 0x953   :  { %1704 = vst.msk [vmem:[#allocation6 + $0x18] sm:$0xff] %vm785_vm4, %v1696_v33  ;;  %v1850_v2 = vpack.c.bf16 %v1696_v33, %v1696_v33  ;;  %2764 = vmatprep.subr.bf16.mxu0 %v3011_v1 }
 0x955   :  { %2749 = vmatmul.mubr.msk.bf16.vlgmr.msra.gmra.mrb[64].mxu1 %vm785_vm4, %v1850_v2  ;;  %v1684_v36 = vpop.xlane.xlu1 %1683 }
 0x956   :  { %2927 = vrcp.f32 %v1684_v36  ;;  %2759 = vmatpush3.bf16.msra.mxu1 %v1961_v35  ;;  %2760 = vmatprep.mubr.msk.bf16.mxu1 %vm3012_vm0, %v3011_v1 }
 0x957   :  { %2770 = vmatprep.subr.bf16.mxu1 %v3011_v1 }
 0x958   :  { %v2926_v39 = vpop.eup %2925 }
 0x959   :  { %v1698_v40 = vmul.f32 %v2926_v39, %v3489_v61  ;;  %v2008_v46 = vpop.permute.xlu1 %2007 }
 0x95b   :  { %1706 = vst.msk [vmem:[#allocation6 + $0x28] sm:$0xff] %vm785_vm4, %v1698_v40  ;;  %v1959_v42 = vpack.c.bf16 %v1698_v40, %v1698_v40 }
 0x95d   :  { %2761 = vmatmul.mubr.msk.bf16.vlgmr.msra.gmra.mrb[68].mxu1 %vm785_vm4, %v1959_v42  ;;  %v2117_v15 = vpop.permute.xlu1 %2116 }
 0x95e   :  { %2772 = vmatprep.mubr.msk.bf16.mxu1 %vm3012_vm0, %v3011_v1 }
 0x960   :  { %v2928_v38 = vpop.eup %2927 }
 0x961   :  { %v1700_v43 = vmul.f32 %v2928_v38, %v3493_v0 }
 0x963   :  { %1708 = vst.msk [vmem:[#allocation6 + $0x38] sm:$0xff] %vm785_vm4, %v1700_v43  ;;  %v2053_v34 = vpack.c.bf16 %v1700_v43, %v1700_v43 }
 0x976   :  { %v1675_v50 = vpop.xlane.xlu0 %1674 }
 0x977   :  { %2929 = vrcp.f32 %v1675_v50 }
 0x97a   :  { %v1681_v57 = vpop.xlane.xlu0 %1680 }
 0x97b   :  { %2931 = vrcp.f32 %v1681_v57 }
 0x97e   :  { %v2055_v32 = vpop.permute.xlu0 %2054 }
 0x97f   :  { %2771 = vmatpush3.bf16.msra.mxu1 %v2055_v32 }
 0x980   :  { %2784 = vmatprep.subr.bf16.mxu1 %v3011_v1 }
 0x981   :  { %v2930_v37 = vpop.eup %2929 }
 0x982   :  { %v1697_v41 = vmul.f32 %v2930_v37, %v2916_v62  ;;  %2773 = vmatmul.mubr.msk.bf16.vlgmr.msra.gmra.mrb[72].mxu1 %vm785_vm4, %v2053_v34 }
 0x983   :  { %2788 = vmatprep.mubr.msk.bf16.mxu1 %vm3012_vm0, %v3011_v1 }
 0x984   :  { %1705 = vst.msk [vmem:[#allocation6 + $0x20] sm:$0xff] %vm785_vm4, %v1697_v41  ;;  %v1912_v44 = vpack.c.bf16 %v1697_v41, %v1697_v41 }
 0x985   :  { %v2932_v45 = vpop.eup %2931 }
 0x986   :  { %v1699_v48 = vmul.f32 %v2932_v45, %v3512_v14  ;;  %2755 = vmatmul.mubr.msk.bf16.vlgmr.msra.gmra.mrb[60].mxu0 %vm785_vm4, %v1912_v44 }
 0x987   :  { %2765 = vmatpush3.bf16.msra.mxu0 %v2008_v46  ;;  %2766 = vmatprep.mubr.msk.bf16.mxu0 %vm3012_vm0, %v3011_v1 }
 0x988   :  { %1707 = vst.msk [vmem:[#allocation6 + $0x30] sm:$0xff] %vm785_vm4, %v1699_v48  ;;  %2776 = vmatprep.subr.bf16.mxu0 %v3011_v1  ;;  %v2006_v47 = vpack.c.bf16 %v1699_v48, %v1699_v48 }
 0x98e   :  { %2767 = vmatmul.mubr.msk.bf16.vlgmr.msra.gmra.mrb[64].mxu0 %vm785_vm4, %v2006_v47 }
 0x98f   :  { %2780 = vmatprep.mubr.msk.bf16.mxu0 %vm3012_vm0, %v3011_v1  ;;  %2777 = vmatpush3.bf16.msra.mxu0 %v2117_v15 }
 0x990   :  { %2778 = vmatprep.subr.bf16.mxu0 %v3011_v1 }
 0x9ad   :  { %v1750_v49 = vpop.f32.mrb[52].mxu0 }
 0x9ae   :  { %v2732_v51 = vpop.f32.mrb[53].mxu0 }
 0x9af   :  { %v1753_v52 = vpop.f32.mrb[54].mxu0 }
 0x9b0   :  { %v2733_v53 = vpop.f32.mrb[55].mxu0 }
 0xa20   :  { %v1797_v54 = vpop.f32.mrb[60].mxu1 }
 0xa21   :  { %v2738_v55 = vpop.f32.mrb[61].mxu1 }
 0xa22   :  { %v1800_v4 = vpop.f32.mrb[62].mxu1 }
 0xa23   :  { %v2739_v58 = vpop.f32.mrb[63].mxu1 }
 0xa24   :  { %v1844_v59 = vpop.f32.mrb[56].mxu0 }
 0xa25   :  { %v2744_v60 = vpop.f32.mrb[57].mxu0 }
 0xa26   :  { %v1847_v61 = vpop.f32.mrb[58].mxu0  ;;  %v2860_v60 = vld [vmem:[%s3657_s4 + $0x8] sm:$0xff]  }
 0xa27   :  { %v2745_v7 = vpop.f32.mrb[59].mxu0  ;;  %v2861_v61 = vld [vmem:[%s3657_s4 + $0x10] sm:$0xff]  }
 0xa28   :  { %v1891_v0 = vpop.f32.mrb[64].mxu1  ;;  %v2862_v7 = vld [vmem:[%s3657_s4 + $0x18] sm:$0xff]  }
 0xa29   :  { %v2750_v8 = vpop.f32.mrb[65].mxu1 }
 0xa2a   :  { %v1894_v11 = vpop.f32.mrb[66].mxu1 }
 0xa2b   :  { %v2751_v63 = vpop.f32.mrb[67].mxu1 }
 0xa30   :  { %v2000_v9 = vpop.f32.mrb[68].mxu1 }
 0xa31   :  { %v2840_v5 = vpack.i.bf16 %v2000_v9, %v1797_v54  ;;  %v2762_v10 = vpop.f32.mrb[69].mxu1 }
 0xa32   :  { %v2003_v12 = vpop.f32.mrb[70].mxu1 }
 0xa33   :  { %v2763_v13 = vpop.f32.mrb[71].mxu1  ;;  %2841 = vrot.lane.b32.xlu0 %v2840_v5, %s3025_s17 }
 0xa55   :  { %v2094_v16 = vpop.f32.mrb[72].mxu1 }
 0xa56   :  { %v2850_v62 = vpack.i.bf16 %v2094_v16, %v1891_v0  ;;  %v2774_v6 = vpop.f32.mrb[73].mxu1 }
 0xa57   :  { %v2097_v14 = vpop.f32.mrb[74].mxu1  ;;  %v2864_v6 = vld [vmem:[%s3657_s4 + $0x28] sm:$0xff]  }
 0xa58   :  { %2851 = vrot.lane.b32.xlu0 %v2850_v62, %s3027_s20  ;;  %v2775_v17 = vpop.f32.mrb[75].mxu1  ;;  %v2863_v62 = vld [vmem:[%s3657_s4 + $0x20] sm:$0xff]  }
 0xa59   :  { %v1953_v18 = vpop.f32.mrb[60].mxu0 }
 0xa5a   :  { %v2756_v19 = vpop.f32.mrb[61].mxu0 }
 0xa5b   :  { %v1956_v20 = vpop.f32.mrb[62].mxu0 }
 0xa5c   :  { %v2757_v21 = vpop.f32.mrb[63].mxu0 }
 0xa61   :  { %v2047_v56 = vpop.f32.mrb[64].mxu0 }
 0xa62   :  { %v2845_v22 = vpack.i.bf16 %v2047_v56, %v1844_v59  ;;  %v2768_v25 = vpop.f32.mrb[65].mxu0  ;;  %v2859_v59 = vld [vmem:[%s3657_s4] sm:$0xff]   ;;  %s3028_s4 = smov [#allocation4]  }
 0xa63   :  { %v2050_v26 = vpop.f32.mrb[66].mxu0  ;;  %2785 = vmatpush3.bf16.msra.mxu1 %v2859_v59 }
 0xa64   :  { %2846 = vrot.lane.b32.xlu1 %v2845_v22, %s3026_s18  ;;  %v2769_v27 = vpop.f32.mrb[67].mxu0  ;;  %2786 = vmatprep.subr.bf16.mxu1 %v3011_v1  ;;  %s2380_s18 = sshll.u32 %s3028_s4, 4  ;;  %s2381_s18 = int_to_ptr.vmem [resolvable:$true] %s2380_s18 }
 0xa65   :  { %s2941_s20 = scalar_lea.vmem %s2381_s18, 1024  ;;  %p2946_p1 = scmp.lt.s32.totalorder %s2381_s18, %s2381_s18 }
 0xa66   :  { %p2942_p0 = scmp.ne.s32.totalorder %s2381_s18, %s2941_s20  ;;  %p2947_p2 = scmp.lt.s32.totalorder %s2941_s20, %s2941_s20 }
 0xa67   :  { %2787 = vmatpush3.bf16.msra.mxu1 %v2860_v60 }
 0xa68   :  { %2118 = vrot.lane.b32.xlu1 %v3348_v3, %s3024_s2  ;;  %p2948_p3 = por %p2947_p2, %p2946_p1 }
 0xa6a   :  { %p2949_p4 = pnand %p2948_p3, %p2942_p0 }
 0xaa5   :  { %v2842_v28 = vpop.permute.xlu0 %2841 }
 0xaa6   :  { %v2844_v29 = vunpack.i.h.bf16 %v2842_v28  ;;  %v2843_v30 = vunpack.i.l.bf16 %v2842_v28 }
 0xaa8   :  { %v1909_v36 = vsel %vm106_vm2, %v1750_v49, %v2843_v30  ;;  %v2112_v39 = vsel %vm106_vm2, %v1953_v18, %v2844_v29 }
 0xaca   :  { %v2852_v31 = vpop.permute.xlu0 %2851 }
 0xacb   :  { %v2854_v40 = vunpack.i.h.bf16 %v2852_v31  ;;  %v2853_v42 = vunpack.i.l.bf16 %v2852_v31 }
 0xad6   :  { %v2847_v33 = vpop.permute.xlu1 %2846 }
 0xad7   :  { %v2849_v2 = vunpack.i.h.bf16 %v2847_v33  ;;  %v2848_v35 = vunpack.i.l.bf16 %v2847_v33 }
 0xad9   :  { %v2113_v38 = vsel %vm785_vm4, %v2112_v39, %v2849_v2  ;;  %v1910_v43 = vsel %vm785_vm4, %v1909_v36, %v2848_v35 }
 0xada   :  { %v2114_v50 = vsel %vm787_vm5, %v2113_v38, %v2854_v40  ;;  %v1911_v3 = vsel %vm787_vm5, %v1910_v43, %v2853_v42  ;;  %v2119_v57 = vpop.permute.xlu1 %2118 }
 0xadb   :  { %v2115_v32 = vpack.c.bf16 %v2114_v50, %v1911_v3  ;;  %2779 = vmatpush3.bf16.msra.mxu0 %v2119_v57 }
 0xadc   :  { %2792 = vmatprep.subr.bf16.mxu0 %v3011_v1 }
 0xade   :  { %2781 = vmatmul.mubr.msk.bf16.vlgmr.msra.gmra.mrb[68].mxu0 %vm57_vm1, %v2115_v32 }
 0xadf   :  { %2800 = vmatprep.mubr.msk.bf16.mxu0 %vm3012_vm0, %v3011_v1  ;;  %2793 = vmatpush3.bf16.msra.mxu0 %v2861_v61 }
 0xae0   :  { %2794 = vmatprep.subr.bf16.mxu0 %v3011_v1 }
 0xae3   :  { %2795 = vmatpush3.bf16.msra.mxu0 %v2862_v7 }
 0xae4   :  { %2796 = vmatprep.subr.bf16.mxu0 %v3011_v1 }
 0xae7   :  { %2797 = vmatpush3.bf16.msra.mxu0 %v2863_v62 }
 0xae8   :  { %2798 = vmatprep.subr.bf16.mxu0 %v3011_v1 }
 0xaeb   :  { %2799 = vmatpush3.bf16.msra.mxu0 %v2864_v6 }
 0xbb1   :  { %v2159_v34 = vpop.f32.mrb[68].mxu0 }
 0xbb2   :  { %v2166_v37 = vadd.f32 %v2159_v34, %v3375_v23  ;;  %v2782_v41 = vpop.f32.mrb[69].mxu0 }
 0xbb3   :  { %v2162_v44 = vpop.f32.mrb[70].mxu0 }
 0xbb4   :  { %v2167_v45 = vadd.f32 %v2162_v44, %v3377_v24  ;;  %v2783_v46 = vpop.f32.mrb[71].mxu0  ;;  %v2168_v48 = vsel %vm57_vm1, %v2166_v37, 0.0 }
 0xbb5   :  { %2169 = vadd.xlane.f32.xlu0 %v2168_v48 }
 0xbb6   :  { %v2171_v47 = vsel %vm57_vm1, %v2167_v45, 0.0 }
 0xbb7   :  { %2172 = vadd.xlane.f32.xlu1 %v2171_v47 }
 0xc42   :  { %v2170_v49 = vpop.xlane.xlu0 %2169 }
 0xc43   :  { %v2174_v51 = vmul.f32 0.03125, %v2170_v49 }
 0xc44   :  { %v2173_v52 = vpop.xlane.xlu1 %2172 }
 0xc45   :  { %v2176_v53 = vsub.f32 %v2166_v37, %v2174_v51  ;;  %v2175_v54 = vmul.f32 0.03125, %v2173_v52 }
 0xc47   :  { %v2177_v55 = vsub.f32 %v2167_v45, %v2175_v54  ;;  %v2178_v4 = vmul.f32 %v2176_v53, %v2176_v53 }
 0xc49   :  { %v2180_v23 = vsel %vm57_vm1, %v2178_v4, 0.0  ;;  %v2179_v58 = vmul.f32 %v2177_v55, %v2177_v55 }
 0xc4a   :  { %2181 = vadd.xlane.f32.xlu0 %v2180_v23 }
 0xc4b   :  { %v2183_v24 = vsel %vm57_vm1, %v2179_v58, 0.0 }
 0xc4e   :  { %2184 = vadd.xlane.f32.xlu0 %v2183_v24 }
 0xcd7   :  { %v2182_v0 = vpop.xlane.xlu0 %2181 }
 0xcd8   :  { %v2186_v8 = vmul.f32 0.03125, %v2182_v0 }
 0xcda   :  { %v2188_v11 = vadd.f32 1e-05, %v2186_v8 }
 0xcdb   :  { %v2185_v63 = vpop.xlane.xlu0 %2184 }
 0xcdc   :  { %v2187_v9 = vmul.f32 0.03125, %v2185_v63  ;;  %2933 = vrsqrt.f32 %v2188_v11 }
 0xcde   :  { %v2189_v5 = vadd.f32 1e-05, %v2187_v9 }
 0xce0   :  { %2935 = vrsqrt.f32 %v2189_v5 }
 0xce6   :  { %v2934_v10 = vpop.eup %2933 }
 0xce7   :  { %v2192_v13 = vmul.f32 %v2934_v10, %v2176_v53 }
 0xcea   :  { %v2936_v12 = vpop.eup %2935 }
 0xceb   :  { %v2193_v15 = vmul.f32 %v2936_v12, %v2177_v55 }
 0xced   :  { %v2206_v16 = vpack.c.bf16 %v2193_v15, %v2192_v13 }
 0xcef   :  { %2789 = vmatmul.mubr.msk.bf16.vlgmr.msra.gmra.mrb[76].mxu1 %vm57_vm1, %v2206_v16 }
 0xdc2   :  { %v2256_v14 = vpop.f32.mrb[76].mxu1 }
 0xdc3   :  { %v2790_v17 = vpop.f32.mrb[77].mxu1  ;;  %v2263_v19 = vmax.f32 %v2256_v14, 0.0 }
 0xdc4   :  { %v2259_v18 = vpop.f32.mrb[78].mxu1 }
 0xdc5   :  { %v2264_v20 = vmax.f32 %v2259_v18, 0.0  ;;  %v2791_v21 = vpop.f32.mrb[79].mxu1 }
 0xdc7   :  { %v2265_v56 = vpack.c.bf16 %v2264_v20, %v2263_v19 }
 0xdc9   :  { %2801 = vmatmul.mubr.msk.bf16.vlgmr.msra.gmra.mrb[72].mxu0 %vm2290_vm6, %v2265_v56 }
 0xe9c   :  { %v2328_v22 = vpop.f32.mrb[72].mxu0 }
 0xe9d   :  { %v2329_v25 = vadd.f32 %v2328_v22, %v2192_v13  ;;  %v2802_v26 = vpop.f32.mrb[73].mxu0 }
 0xe9e   :  { %v2331_v27 = vpop.f32.mrb[74].mxu0 }
 0xe9f   :  { %v2332_v28 = vadd.f32 %v2331_v27, %v2193_v15  ;;  %v2803_v1 = vpop.f32.mrb[75].mxu0  ;;  %v2335_v29 = vsel %vm57_vm1, %v2329_v25, 0.0 }
 0xea0   :  { %2336 = vadd.xlane.f32.xlu1 %v2335_v29 }
 0xea1   :  { %v2338_v30 = vsel %vm57_vm1, %v2332_v28, 0.0 }
 0xea2   :  { %2339 = vadd.xlane.f32.xlu0 %v2338_v30 }
 0xf2d   :  { %v2337_v31 = vpop.xlane.xlu1 %2336 }
 0xf2e   :  { %v2341_v33 = vmul.f32 0.03125, %v2337_v31 }
 0xf2f   :  { %v2340_v2 = vpop.xlane.xlu0 %2339 }
 0xf30   :  { %v2343_v35 = vsub.f32 %v2329_v25, %v2341_v33  ;;  %v2342_v36 = vmul.f32 0.03125, %v2340_v2 }
 0xf32   :  { %v2344_v39 = vsub.f32 %v2332_v28, %v2342_v36  ;;  %v2345_v40 = vmul.f32 %v2343_v35, %v2343_v35 }
 0xf34   :  { %v2347_v42 = vsel %vm57_vm1, %v2345_v40, 0.0  ;;  %v2346_v38 = vmul.f32 %v2344_v39, %v2344_v39 }
 0xf35   :  { %2348 = vadd.xlane.f32.xlu1 %v2347_v42 }
 0xf36   :  { %v2350_v43 = vsel %vm57_vm1, %v2346_v38, 0.0 }
 0xf37   :  { %2351 = vadd.xlane.f32.xlu0 %v2350_v43 }
 0xf38   :  { %2952 = shalt.err (!%p2949_p4)
}
 0xf39   :  { %s2953_s23 = scalar_lea.hbm %s3659_s6, 1024 }
 0xf3a   :  { %p2954_p5 = scmp.ne.s32.totalorder %s3659_s6, %s2953_s23  ;;  %p2957_p6 = scmp.lt.u32.totalorder %s2953_s23, %s3659_s6 }
 0xf3c   :  { %p2959_p7 = pnand %p2957_p6, %p2954_p5 }
 0xf3e   :  { %2962 = shalt.err (!%p2959_p7)
}
 0xf3f   :  { %s3029_s27 = smov 128   ;;  %s3030_s30 = smov [#allocation6]  }
 0xf40   :  { %2386 = dma.vmem_to_hbm [thread:$0]  %s2381_s18, 1024, %s3659_s6, [#allocation5], %s3029_s27, %s3029_s27, %s3025_s17  }
 0xf41   :  { %s2392_s8 = sshll.u32 %s3030_s30, 4  ;;  %s2393_s8 = int_to_ptr.vmem [resolvable:$true] %s2392_s8 }
 0xf42   :  { %s2963_s1 = scalar_lea.vmem %s2393_s8, 1024  ;;  %p2968_p9 = scmp.lt.s32.totalorder %s2393_s8, %s2393_s8 }
 0xf43   :  { %p2964_p8 = scmp.ne.s32.totalorder %s2393_s8, %s2963_s1  ;;  %p2969_p10 = scmp.lt.s32.totalorder %s2963_s1, %s2963_s1 }
 0xf45   :  { %p2970_p11 = por %p2969_p10, %p2968_p9 }
 0xf47   :  { %p2971_p12 = pnand %p2970_p11, %p2964_p8 }
 0xf49   :  { %2974 = shalt.err (!%p2971_p12)
}
 0xf4a   :  { %s2975_s10 = scalar_lea.hbm %s3660_s7, 1024 }
 0xf4b   :  { %p2976_p13 = scmp.ne.s32.totalorder %s3660_s7, %s2975_s10  ;;  %p2979_p0 = scmp.lt.u32.totalorder %s2975_s10, %s3660_s7 }
 0xf4d   :  { %p2981_p1 = pnand %p2979_p0, %p2976_p13 }
 0xf4f   :  { %2984 = shalt.err (!%p2981_p1)
}
 0xf50   :  { %2398 = dma.vmem_to_hbm [thread:$0]  %s2393_s8, 1024, %s3660_s7, [#allocation5], %s3029_s27, %s3029_s27, %s3025_s17  }
 0xf51   :  { %s3031_s15 = smov [#allocation2]  }
 0xf52   :  { %s2368_s19 = sshll.u32 %s3031_s15, 4  ;;  %s2369_s19 = int_to_ptr.vmem [resolvable:$true] %s2368_s19 }
 0xf53   :  { %s2985_s7 = scalar_lea.vmem %s2369_s19, 256  ;;  %p2990_p3 = scmp.lt.s32.totalorder %s2369_s19, %s2369_s19 }
 0xf54   :  { %p2986_p2 = scmp.ne.s32.totalorder %s2369_s19, %s2985_s7  ;;  %p2991_p4 = scmp.lt.s32.totalorder %s2985_s7, %s2985_s7 }
 0xf56   :  { %p2992_p5 = por %p2991_p4, %p2990_p3 }
 0xf58   :  { %p2993_p6 = pnand %p2992_p5, %p2986_p2 }
 0xfc2   :  { %v2349_v50 = vpop.xlane.xlu1 %2348 }
 0xfc3   :  { %v2353_v3 = vmul.f32 0.03125, %v2349_v50 }
 0xfc4   :  { %v2352_v57 = vpop.xlane.xlu0 %2351 }
 0xfc5   :  { %v2355_v32 = vadd.f32 1e-05, %v2353_v3  ;;  %v2354_v34 = vmul.f32 0.03125, %v2352_v57 }
 0xfc7   :  { %2937 = vrsqrt.f32 %v2355_v32  ;;  %v2356_v37 = vadd.f32 1e-05, %v2354_v34 }
 0xfc9   :  { %2939 = vrsqrt.f32 %v2356_v37 }
 0xfd1   :  { %v2938_v41 = vpop.eup %2937 }
 0xfd2   :  { %v2359_v44 = vmul.f32 %v2938_v41, %v2343_v35 }
 0xfd3   :  { %v2940_v45 = vpop.eup %2939 }
 0xfd4   :  { %v2360_v46 = vmul.f32 %v2940_v45, %v2344_v39  ;;  %2361 = vst.msk [vmem:[#allocation2] sm:$0xff] %vm57_vm1, %v2359_v44 }
 0xfd6   :  { %2362 = vst.msk [vmem:[#allocation2 + $0x8] sm:$0xff] %vm57_vm1, %v2360_v46 }
 0xfd7   :  { %2996 = shalt.err (!%p2993_p6)
}
 0xfd8   :  { %s2997_s18 = scalar_lea.hbm %s3658_s5, 256 }
 0xfd9   :  { %p2998_p7 = scmp.ne.s32.totalorder %s3658_s5, %s2997_s18  ;;  %p3001_p8 = scmp.lt.u32.totalorder %s2997_s18, %s3658_s5 }
 0xfdb   :  { %p3003_p9 = pnand %p3001_p8, %p2998_p7 }
 0xfdd   :  { %3006 = shalt.err (!%p3003_p9)
}
 0xfde   :  { %2374 = dma.vmem_to_hbm [thread:$0]  %s2369_s19, 256, %s3658_s5, [#allocation3], %s3029_s27, %s3029_s27, %s3025_s17  }
 0xfdf   :  { %3007 = dma.done.wait [#allocation3], 256  }
 0xfe0   :  { %3008 = vsyncadd [#allocation3], 4294967040 }
 0xfe1   :  { %3009 = dma.done.wait [#allocation5], 2048  }
 0xfe2   :  { %3010 = vsyncadd [#allocation5], 4294965248 }
 0xfe3   :  { %2408 = vsyncpa [#allocation3], 1 }
 0xfe4   :  { %2409 = vsyncpa [#allocation5], 1 }

</bundles_post_ra>
